<compile_context>
chip_gen: v7x
topology: tpu7x:2x2x1
jax: 0.10.0
libtpu: 0.0.40
codegen_flags: <defaults>
</compile_context>

<pallas_src>
import functools

import jax
import jax.numpy as jnp
from jax import lax
from jax.experimental import pallas as pl
from jax.experimental.pallas import tpu as pltpu


# MXU operand dtype (accumulation is always f32). bf16 is supported on the MXU
# of v5e/v6e/v7x alike; set to jnp.float32 to recover bit-tight verification.
MATMUL_DTYPE = jnp.bfloat16


# ---------------------------------------------------------------------------
# pltpu.roll convention: we need reads of the form y[q] = x[(q + off) % L].
# With numpy/jnp.roll semantics that is shift = (-off) % L.  The convention is
# probed once, lazily, and cached, so library use (not just __main__) is safe.
# ---------------------------------------------------------------------------
_ROLL_IS_NUMPY = None


def _roll_is_numpy_convention():
    global _ROLL_IS_NUMPY
    if _ROLL_IS_NUMPY is None:
        def probe(x_ref, o_ref):
            o_ref[...] = pltpu.roll(x_ref[...], 1, 1)
        try:
            x = jnp.arange(8 * 128, dtype=jnp.int32).reshape(8, 128)
            out = pl.pallas_call(
                probe, out_shape=jax.ShapeDtypeStruct((8, 128), jnp.int32))(x)
            _ROLL_IS_NUMPY = bool(jnp.array_equal(out, jnp.roll(x, 1, axis=1)))
        except Exception:
            # Probe can only fail if called under an outer trace; jnp.roll
            # semantics is the documented/expected convention.
            _ROLL_IS_NUMPY = True
    return _ROLL_IS_NUMPY


# ---------------------------------------------------------------------------
# Fused UNetBlock kernel.  One grid step == NBLK packed images.
# Activations: (CH, Lblk) f32; each image occupies one Lpad-aligned lane
# segment holding its zero-padded (H+2)x(W+2) grid (zero halo + zero tail).
# ---------------------------------------------------------------------------
def _unet_block_kernel(mask_ref, x_ref, w_ref, b_ref, o_ref,
                       *, Wp, Lblk, roll_is_numpy, mxu_dtype):
    masks = mask_ref[...]                 # (8, Lblk) f32 {0,1}
    interior = masks[0:1]                 # 1 inside each image, 0 on halo/tail
    w_even, w_odd = masks[1:2], masks[2:3]
    h_even, h_odd = masks[3:4], masks[4:5]
    biases = b_ref[...]                   # (CH, 4) f32

    # Tap offsets on the flattened padded grid, tap-major order (dy*3 + dx).
    offsets = [(dy - 1) * Wp + (dx - 1) for dy in range(3) for dx in range(3)]

    def shifted(x, off):
        # y[:, q] = x[:, (q + off) % Lblk]   (lane rotation on the XLU)
        if off == 0:
            return x
        shift = (-off) % Lblk if roll_is_numpy else off % Lblk
        return pltpu.roll(x, shift, 1)

    def stack9(x):
        # im2col on the lane axis: 9 XLU rotations stacked along sublanes,
        # single cast to the MXU operand dtype.  (CH, Lblk) -> (9*CH, Lblk)
        return jnp.concatenate([shifted(x, off) for off in offsets],
                               axis=0).astype(mxu_dtype)

    def conv(xs, k):
        # ONE fused MXU matmul: (CH, 9*CH) @ (9*CH, Lblk), f32 accumulation.
        return jnp.dot(w_ref[k], xs, preferred_element_type=jnp.float32)

    def act(pre):
        # ReLU, then re-zero halo / tail lanes so the next conv sees zero pad.
        return jnp.maximum(pre, 0.0) * interior

    x = x_ref[0]                          # (CH, Lblk) f32

    # ---- encoder UnetBasicBlock: C -> F -> F ----
    m = act(conv(stack9(x), 0) + biases[:, 0:1])
    r = act(conv(stack9(m), 1) + biases[:, 1:2])

    # ---- inner module: identity ----

    # ---- avgpool2x2 + nearest-upsample2x fused (re_alpha folded into w_ref[2]):
    # every output pixel becomes the mean of its own 2x2 block (pair-partner
    # rolls along w then along h).
    rw = w_even * shifted(r, 1) + w_odd * shifted(r, -1)
    sw = r + rw
    sh = h_even * shifted(sw, Wp) + h_odd * shifted(sw, -Wp)
    up = (0.25 * (sw + sh)) * interior

    # ---- decoder UnetBasicBlock on cat([up, r]): 2F -> F -> C ----
    # Channel concat replaced by two half-weight matmuls summed.
    m2 = act(conv(stack9(up), 2) + conv(stack9(r), 3) + biases[:, 2:3])
    out = act(conv(stack9(m2), 4) + biases[:, 3:4])

    o_ref[0] = out.astype(o_ref.dtype)    # lane-dense (CH, Lblk) store


# ---------------------------------------------------------------------------
# Wrapper: layout plumbing only (tiny one-time pads / reshapes / transposes).
# ---------------------------------------------------------------------------
def _stack_taps(w):
    # (3, 3, Cin, Cout) HWIO -> (Cout, 9*Cin), tap-major / Cin-minor,
    # matching the sublane order produced by stack9() in the kernel.
    kh, kw, cin, cout = w.shape
    return jnp.transpose(w, (3, 0, 1, 2)).reshape(cout, kh * kw * cin)


def _pad_hwio(w, cin, cout):
    return jnp.pad(w, ((0, 0), (0, 0),
                       (0, cin - w.shape[2]), (0, cout - w.shape[3])))


def unet_block_forward(x_nchw, params, *, images_per_block=8):
    N, C, H, W = x_nchw.shape
    assert H % 2 == 0 and W % 2 == 0, "avgpool2x2 requires even H, W"
    (w1, b1), (w2, b2) = params["enc_block"]
    (w3, b3), (w4, b4) = params["dec_block"]
    F = w1.shape[-1]

    # Run every conv at CH channels (full sublane groups); zero-pad the rest.
    CH = max(8, -(-max(C, F) // 8) * 8)

    Wp = W + 2
    n_pad = (H + 2) * Wp
    Lpad = -(-n_pad // 128) * 128               # per-image lane segment
    nblk = max(1, min(images_per_block, N))     # images packed per grid step
    nblocks = -(-N // nblk)                     # grid length
    Npad = nblocks * nblk
    Lblk = nblk * Lpad

    # Fold the rezero scale into the upsample-branch half of dec conv1.
    w3_up = w3[:, :, :F, :] * params["re_alpha"]
    w3_r = w3[:, :, F:, :]

    # Packed weight / bias operands (bf16 weights for the MXU, f32 biases).
    w_all = jnp.stack([
        _stack_taps(_pad_hwio(w1, CH, CH)),
        _stack_taps(_pad_hwio(w2, CH, CH)),
        _stack_taps(_pad_hwio(w3_up, CH, CH)),
        _stack_taps(_pad_hwio(w3_r, CH, CH)),
        _stack_taps(_pad_hwio(w4, CH, CH)),
    ]).astype(MATMUL_DTYPE)                     # (5, CH, 9*CH)
    b_all = jnp.stack([
        jnp.pad(b1, (0, CH - b1.shape[0])),
        jnp.pad(b2, (0, CH - b2.shape[0])),
        jnp.pad(b3, (0, CH - b3.shape[0])),
        jnp.pad(b4, (0, CH - b4.shape[0])),
    ], axis=1).astype(jnp.float32)              # (CH, 4)

    # Lane-coordinate masks, hoisted out of the kernel (resident input).
    q = jnp.arange(Lpad, dtype=jnp.int32)
    hp = q // Wp
    wp = q - hp * Wp
    interior = (hp >= 1) & (hp <= H) & (wp >= 1) & (wp <= W)
    w_even = (wp % 2) == 1                      # image col (wp-1) is even
    h_even = (hp % 2) == 1                      # image row (hp-1) is even
    zero = jnp.zeros((Lpad,), bool)
    mask_rows = jnp.stack([interior, w_even, ~w_even, h_even, ~h_even,
                           zero, zero, zero]).astype(jnp.float32)
    masks = jnp.tile(mask_rows, (1, nblk))      # (8, Lblk)

    # Input: pad batch/channels, zero-pad spatially, pack NBLK images per block
    # along the lane axis (each image keeps its own Lpad-aligned segment).
    xp = jnp.pad(x_nchw.astype(jnp.float32),
                 ((0, Npad - N), (0, CH - C), (1, 1), (1, 1)))
    xp = xp.reshape(Npad, CH, n_pad)
    xp = jnp.pad(xp, ((0, 0), (0, 0), (0, Lpad - n_pad)))
    xp = xp.reshape(nblocks, nblk, CH, Lpad).transpose(0, 2, 1, 3)
    xp = xp.reshape(nblocks, CH, Lblk)

    kern = functools.partial(_unet_block_kernel, Wp=Wp, Lblk=Lblk,
                             roll_is_numpy=_roll_is_numpy_convention(),
                             mxu_dtype=MATMUL_DTYPE)

    out_blk = pl.pallas_call(
        kern,
        out_shape=jax.ShapeDtypeStruct((nblocks, CH, Lblk), jnp.float32),
        grid=(nblocks,),
        in_specs=[
            pl.BlockSpec((8, Lblk), lambda n: (0, 0)),         # masks (resident)
            pl.BlockSpec((1, CH, Lblk), lambda n: (n, 0, 0)),  # packed images
            pl.BlockSpec(w_all.shape, lambda n: (0, 0, 0)),    # weights (resident)
            pl.BlockSpec(b_all.shape, lambda n: (0, 0)),       # biases  (resident)
        ],
        out_specs=pl.BlockSpec((1, CH, Lblk), lambda n: (n, 0, 0)),
        compiler_params=pltpu.CompilerParams(
            dimension_semantics=("parallel",)),
    )(masks, xp, w_all, b_all)

    # Unpack: lane segments -> images, strip channel/lane/halo padding.
    out = out_blk.reshape(nblocks, CH, nblk, Lpad).transpose(0, 2, 1, 3)
    out = out.reshape(Npad, CH, Lpad)[:N, :C, :n_pad]
    out = out.reshape(N, C, H + 2, W + 2)[:, :, 1:H + 1, 1:W + 1]
    return out


# ---------------------------------------------------------------------------
# Deterministic parameter construction (shapes dictated by the module __init__).
# ---------------------------------------------------------------------------
def init_conv(key, cin, cout):
    kw, kb = jax.random.split(key)
    limit = (1.0 / (cin * 9)) ** 0.5                 # ~ PyTorch Conv2d default
    w = jax.random.uniform(kw, (3, 3, cin, cout), jnp.float32, -limit, limit)
    b = jax.random.uniform(kb, (cout,), jnp.float32, -limit, limit)
    return w, b


def make_params(key, in_channels, features):
    ks = jax.random.split(key, 4)
    enc = (init_conv(ks[0], in_channels, features),        # C  -> F (mid = F)
           init_conv(ks[1], features, features))           # F  -> F
    dec = (init_conv(ks[2], 2 * features, features),       # 2F -> mid = F
           init_conv(ks[3], features, in_channels))        # F  -> C
    # rezero: nn.Parameter(torch.zeros((1,))) — use a non-zero value so the
    # upsample branch is actually exercised.
    re_alpha = jnp.float32(0.1)
    return {"enc_block": enc, "dec_block": dec, "re_alpha": re_alpha}


# ---------------------------------------------------------------------------
# Pure-JAX reference (NCHW) for verification.
# ---------------------------------------------------------------------------
def conv3x3_ref(x, w, b):
    y = lax.conv_general_dilated(x, w, (1, 1), "SAME",
                                 dimension_numbers=("NCHW", "HWIO", "NCHW"))
    return jnp.maximum(y + b[None, :, None, None], 0.0)


def unet_block_forward_ref(x, params):
    (w1, b1), (w2, b2) = params["enc_block"]
    r = conv3x3_ref(conv3x3_ref(x, w1, b1), w2, b2)
    N, Cf, Hh, Ww = r.shape
    y = r.reshape(N, Cf, Hh // 2, 2, Ww // 2, 2).mean(axis=(3, 5))
    y = params["re_alpha"] * jnp.repeat(jnp.repeat(y, 2, axis=2), 2, axis=3)
    y = jnp.concatenate([y, r], axis=1)
    (w3, b3), (w4, b4) = params["dec_block"]
    return conv3x3_ref(conv3x3_ref(y, w3, b3), w4, b4)


if __name__ == "__main__":
    key = jax.random.PRNGKey(0)
    k_x, k_p = jax.random.split(key)

    N, C, H, W = 2, 4, 16, 16      # image_shape = (4, 16, 16)
    FEATURES = 8

    x = jax.random.normal(k_x, (N, C, H, W), jnp.float32)
    params = make_params(k_p, C, FEATURES)

    out = jax.block_until_ready(unet_block_forward(x, params))
    assert out.shape == (N, C, H, W), out.shape

    ref = jax.block_until_ready(unet_block_forward_ref(x, params))
    err = float(jnp.max(jnp.abs(out - ref)))
    # bf16 MXU operands (f32 accumulation) -> relative tolerance, per review.
    tol = 5e-2 * max(1.0, float(jnp.max(jnp.abs(ref))))
    assert err < tol, (err, tol)

    print("KERNEL_OK")
</pallas_src>

<mosaic_0001>
module attributes {stable_mosaic.version = 11 : i64} {
  func.func @probe(%arg0: memref<8x128xi32, #tpu.memory_space<vmem>>, %arg1: memref<8x128xi32, #tpu.memory_space<vmem>>) attributes {dimension_semantics = [], scalar_prefetch = 0 : i64, scratch_operands = 0 : i64, tpu.core_type = #tpu.core_type<tc>} {
    %c0 = arith.constant 0 : index
    %c0_0 = arith.constant 0 : index
    %0 = vector.load %arg0[%c0, %c0_0] : memref<8x128xi32, #tpu.memory_space<vmem>>, vector<8x128xi32>
    %c1_i32 = arith.constant 1 : i32
    %1 = tpu.dynamic_rotate %0 by %c1_i32 dim 1 : vector<8x128xi32>, i32 -> vector<8x128xi32>
    %c0_1 = arith.constant 0 : index
    %c0_2 = arith.constant 0 : index
    %2 = vector.load %arg1[%c0_1, %c0_2] : memref<8x128xi32, #tpu.memory_space<vmem>>, vector<8x128xi32>
    tpu.vector_store %arg1[%c0_1, %c0_2], %1 {strides = array<i32>} : memref<8x128xi32, #tpu.memory_space<vmem>>, vector<8x128xi32>,
    return
  }
}

module attributes {stable_mosaic.version = 11 : i64} {
  func.func @_unet_block_kernel(%arg0: i32, %arg1: memref<8x768xf32, #tpu.memory_space<vmem>>, %arg2: memref<1x8x768xf32, #tpu.memory_space<vmem>>, %arg3: memref<5x8x72xbf16, #tpu.memory_space<vmem>>, %arg4: memref<8x4xf32, #tpu.memory_space<vmem>>, %arg5: memref<1x8x768xf32, #tpu.memory_space<vmem>>) attributes {dimension_semantics = [#tpu.dimension_semantics<parallel>], iteration_bounds = array<i64: 1>, scalar_prefetch = 0 : i64, scratch_operands = 0 : i64, tpu.core_type = #tpu.core_type<tc>, window_params = [{pipeline_mode = #tpu.pipeline_mode<synchronous>, transform_indices = @transform_0, window_bounds = array<i64: 8, 768>}, {transform_indices = @transform_1, window_bounds = array<i64: 1, 8, 768>}, {pipeline_mode = #tpu.pipeline_mode<synchronous>, transform_indices = @transform_2, window_bounds = array<i64: 5, 8, 72>}, {pipeline_mode = #tpu.pipeline_mode<synchronous>, transform_indices = @transform_3, window_bounds = array<i64: 8, 4>}, {transform_indices = @transform_4, window_bounds = array<i64: 1, 8, 768>}]} {
    %c0 = arith.constant 0 : index
    %c0_0 = arith.constant 0 : index
    %0 = vector.load %arg1[%c0, %c0_0] : memref<8x768xf32, #tpu.memory_space<vmem>>, vector<8x768xf32>
    %1 = vector.extract_strided_slice %0 {offsets = [0, 0], sizes = [1, 768], strides = [1, 1]} : vector<8x768xf32> to vector<1x768xf32>
    %2 = vector.extract_strided_slice %0 {offsets = [1, 0], sizes = [1, 768], strides = [1, 1]} : vector<8x768xf32> to vector<1x768xf32>
    %3 = vector.extract_strided_slice %0 {offsets = [2, 0], sizes = [1, 768], strides = [1, 1]} : vector<8x768xf32> to vector<1x768xf32>
    %4 = vector.extract_strided_slice %0 {offsets = [3, 0], sizes = [1, 768], strides = [1, 1]} : vector<8x768xf32> to vector<1x768xf32>
    %5 = vector.extract_strided_slice %0 {offsets = [4, 0], sizes = [1, 768], strides = [1, 1]} : vector<8x768xf32> to vector<1x768xf32>
    %c0_1 = arith.constant 0 : index
    %c0_2 = arith.constant 0 : index
    %6 = vector.load %arg4[%c0_1, %c0_2] : memref<8x4xf32, #tpu.memory_space<vmem>>, vector<8x4xf32>
    %c0_3 = arith.constant 0 : index
    %c0_4 = arith.constant 0 : index
    %c0_5 = arith.constant 0 : index
    %7 = vector.load %arg2[%c0_3, %c0_4, %c0_5] : memref<1x8x768xf32, #tpu.memory_space<vmem>>, vector<1x8x768xf32>
    %8 = vector.shape_cast %7 : vector<1x8x768xf32> to vector<8x768xf32>
    %c19_i32 = arith.constant 19 : i32
    %9 = tpu.dynamic_rotate %8 by %c19_i32 dim 1 : vector<8x768xf32>, i32 -> vector<8x768xf32>
    %c18_i32 = arith.constant 18 : i32
    %10 = tpu.dynamic_rotate %8 by %c18_i32 dim 1 : vector<8x768xf32>, i32 -> vector<8x768xf32>
    %c17_i32 = arith.constant 17 : i32
    %11 = tpu.dynamic_rotate %8 by %c17_i32 dim 1 : vector<8x768xf32>, i32 -> vector<8x768xf32>
    %c1_i32 = arith.constant 1 : i32
    %12 = tpu.dynamic_rotate %8 by %c1_i32 dim 1 : vector<8x768xf32>, i32 -> vector<8x768xf32>
    %c767_i32 = arith.constant 767 : i32
    %13 = tpu.dynamic_rotate %8 by %c767_i32 dim 1 : vector<8x768xf32>, i32 -> vector<8x768xf32>
    %c751_i32 = arith.constant 751 : i32
    %14 = tpu.dynamic_rotate %8 by %c751_i32 dim 1 : vector<8x768xf32>, i32 -> vector<8x768xf32>
    %c750_i32 = arith.constant 750 : i32
    %15 = tpu.dynamic_rotate %8 by %c750_i32 dim 1 : vector<8x768xf32>, i32 -> vector<8x768xf32>
    %c749_i32 = arith.constant 749 : i32
    %16 = tpu.dynamic_rotate %8 by %c749_i32 dim 1 : vector<8x768xf32>, i32 -> vector<8x768xf32>
    %17 = tpu.concatenate %9, %10, %11, %12, %8, %13, %14, %15, %16 in 0 : vector<8x768xf32>, vector<8x768xf32>, vector<8x768xf32>, vector<8x768xf32>, vector<8x768xf32>, vector<8x768xf32>, vector<8x768xf32>, vector<8x768xf32>, vector<8x768xf32> -> vector<72x768xf32>
    %18 = arith.truncf %17 : vector<72x768xf32> to vector<72x768xbf16>
    %c0_6 = arith.constant 0 : index
    %c0_7 = arith.constant 0 : index
    %c0_8 = arith.constant 0 : index
    %19 = vector.load %arg3[%c0_6, %c0_7, %c0_8] : memref<5x8x72xbf16, #tpu.memory_space<vmem>>, vector<1x8x72xbf16>
    %20 = vector.shape_cast %19 : vector<1x8x72xbf16> to vector<8x72xbf16>
    %cst = arith.constant dense<0.000000e+00> : vector<8x768xf32>
    %21 = tpu.matmul %20, %18, %cst {dimension_numbers = #tpu.dot_dimension_numbers<[1], [0], [0], [1], [0, 0, 1, 1], [], []>} : vector<8x72xbf16>, vector<72x768xbf16>, vector<8x768xf32> -> vector<8x768xf32>
    %22 = vector.extract_strided_slice %6 {offsets = [0, 0], sizes = [8, 1], strides = [1, 1]} : vector<8x4xf32> to vector<8x1xf32>
    %23 = vector.broadcast %22 : vector<8x1xf32> to vector<8x768xf32>
    %24 = arith.addf %21, %23 : vector<8x768xf32>
    %cst_9 = arith.constant 0.000000e+00 : f32
    %25 = vector.broadcast %cst_9 : f32 to vector<8x768xf32>
    %26 = arith.maximumf %24, %25 : vector<8x768xf32>
    %27 = vector.broadcast %1 : vector<1x768xf32> to vector<8x768xf32>
    %28 = arith.mulf %26, %27 : vector<8x768xf32>
    %c19_i32_10 = arith.constant 19 : i32
    %29 = tpu.dynamic_rotate %28 by %c19_i32_10 dim 1 : vector<8x768xf32>, i32 -> vector<8x768xf32>
    %c18_i32_11 = arith.constant 18 : i32
    %30 = tpu.dynamic_rotate %28 by %c18_i32_11 dim 1 : vector<8x768xf32>, i32 -> vector<8x768xf32>
    %c17_i32_12 = arith.constant 17 : i32
    %31 = tpu.dynamic_rotate %28 by %c17_i32_12 dim 1 : vector<8x768xf32>, i32 -> vector<8x768xf32>
    %c1_i32_13 = arith.constant 1 : i32
    %32 = tpu.dynamic_rotate %28 by %c1_i32_13 dim 1 : vector<8x768xf32>, i32 -> vector<8x768xf32>
    %c767_i32_14 = arith.constant 767 : i32
    %33 = tpu.dynamic_rotate %28 by %c767_i32_14 dim 1 : vector<8x768xf32>, i32 -> vector<8x768xf32>
    %c751_i32_15 = arith.constant 751 : i32
    %34 = tpu.dynamic_rotate %28 by %c751_i32_15 dim 1 : vector<8x768xf32>, i32 -> vector<8x768xf32>
    %c750_i32_16 = arith.constant 750 : i32
    %35 = tpu.dynamic_rotate %28 by %c750_i32_16 dim 1 : vector<8x768xf32>, i32 -> vector<8x768xf32>
    %c749_i32_17 = arith.constant 749 : i32
    %36 = tpu.dynamic_rotate %28 by %c749_i32_17 dim 1 : vector<8x768xf32>, i32 -> vector<8x768xf32>
    %37 = tpu.concatenate %29, %30, %31, %32, %28, %33, %34, %35, %36 in 0 : vector<8x768xf32>, vector<8x768xf32>, vector<8x768xf32>, vector<8x768xf32>, vector<8x768xf32>, vector<8x768xf32>, vector<8x768xf32>, vector<8x768xf32>, vector<8x768xf32> -> vector<72x768xf32>
    %38 = arith.truncf %37 : vector<72x768xf32> to vector<72x768xbf16>
    %c1 = arith.constant 1 : index
    %c0_18 = arith.constant 0 : index
    %c0_19 = arith.constant 0 : index
    %39 = vector.load %arg3[%c1, %c0_18, %c0_19] : memref<5x8x72xbf16, #tpu.memory_space<vmem>>, vector<1x8x72xbf16>
    %40 = vector.shape_cast %39 : vector<1x8x72xbf16> to vector<8x72xbf16>
    %cst_20 = arith.constant dense<0.000000e+00> : vector<8x768xf32>
    %41 = tpu.matmul %40, %38, %cst_20 {dimension_numbers = #tpu.dot_dimension_numbers<[1], [0], [0], [1], [0, 0, 1, 1], [], []>} : vector<8x72xbf16>, vector<72x768xbf16>, vector<8x768xf32> -> vector<8x768xf32>
    %42 = vector.extract_strided_slice %6 {offsets = [0, 1], sizes = [8, 1], strides = [1, 1]} : vector<8x4xf32> to vector<8x1xf32>
    %43 = vector.broadcast %42 : vector<8x1xf32> to vector<8x768xf32>
    %44 = arith.addf %41, %43 : vector<8x768xf32>
    %cst_21 = arith.constant 0.000000e+00 : f32
    %45 = vector.broadcast %cst_21 : f32 to vector<8x768xf32>
    %46 = arith.maximumf %44, %45 : vector<8x768xf32>
    %47 = vector.broadcast %1 : vector<1x768xf32> to vector<8x768xf32>
    %48 = arith.mulf %46, %47 : vector<8x768xf32>
    %c767_i32_22 = arith.constant 767 : i32
    %49 = tpu.dynamic_rotate %48 by %c767_i32_22 dim 1 : vector<8x768xf32>, i32 -> vector<8x768xf32>
    %50 = vector.broadcast %2 : vector<1x768xf32> to vector<8x768xf32>
    %51 = arith.mulf %50, %49 : vector<8x768xf32>
    %c1_i32_23 = arith.constant 1 : i32
    %52 = tpu.dynamic_rotate %48 by %c1_i32_23 dim 1 : vector<8x768xf32>, i32 -> vector<8x768xf32>
    %53 = vector.broadcast %3 : vector<1x768xf32> to vector<8x768xf32>
    %54 = arith.mulf %53, %52 : vector<8x768xf32>
    %55 = arith.addf %51, %54 : vector<8x768xf32>
    %56 = arith.addf %48, %55 : vector<8x768xf32>
    %c750_i32_24 = arith.constant 750 : i32
    %57 = tpu.dynamic_rotate %56 by %c750_i32_24 dim 1 : vector<8x768xf32>, i32 -> vector<8x768xf32>
    %58 = vector.broadcast %4 : vector<1x768xf32> to vector<8x768xf32>
    %59 = arith.mulf %58, %57 : vector<8x768xf32>
    %c18_i32_25 = arith.constant 18 : i32
    %60 = tpu.dynamic_rotate %56 by %c18_i32_25 dim 1 : vector<8x768xf32>, i32 -> vector<8x768xf32>
    %61 = vector.broadcast %5 : vector<1x768xf32> to vector<8x768xf32>
    %62 = arith.mulf %61, %60 : vector<8x768xf32>
    %63 = arith.addf %59, %62 : vector<8x768xf32>
    %64 = arith.addf %56, %63 : vector<8x768xf32>
    %cst_26 = arith.constant 2.500000e-01 : f32
    %65 = vector.broadcast %cst_26 : f32 to vector<8x768xf32>
    %66 = arith.mulf %65, %64 : vector<8x768xf32>
    %67 = vector.broadcast %1 : vector<1x768xf32> to vector<8x768xf32>
    %68 = arith.mulf %66, %67 : vector<8x768xf32>
    %c19_i32_27 = arith.constant 19 : i32
    %69 = tpu.dynamic_rotate %68 by %c19_i32_27 dim 1 : vector<8x768xf32>, i32 -> vector<8x768xf32>
    %c18_i32_28 = arith.constant 18 : i32
    %70 = tpu.dynamic_rotate %68 by %c18_i32_28 dim 1 : vector<8x768xf32>, i32 -> vector<8x768xf32>
    %c17_i32_29 = arith.constant 17 : i32
    %71 = tpu.dynamic_rotate %68 by %c17_i32_29 dim 1 : vector<8x768xf32>, i32 -> vector<8x768xf32>
    %c1_i32_30 = arith.constant 1 : i32
    %72 = tpu.dynamic_rotate %68 by %c1_i32_30 dim 1 : vector<8x768xf32>, i32 -> vector<8x768xf32>
    %c767_i32_31 = arith.constant 767 : i32
    %73 = tpu.dynamic_rotate %68 by %c767_i32_31 dim 1 : vector<8x768xf32>, i32 -> vector<8x768xf32>
    %c751_i32_32 = arith.constant 751 : i32
    %74 = tpu.dynamic_rotate %68 by %c751_i32_32 dim 1 : vector<8x768xf32>, i32 -> vector<8x768xf32>
    %c750_i32_33 = arith.constant 750 : i32
    %75 = tpu.dynamic_rotate %68 by %c750_i32_33 dim 1 : vector<8x768xf32>, i32 -> vector<8x768xf32>
    %c749_i32_34 = arith.constant 749 : i32
    %76 = tpu.dynamic_rotate %68 by %c749_i32_34 dim 1 : vector<8x768xf32>, i32 -> vector<8x768xf32>
    %77 = tpu.concatenate %69, %70, %71, %72, %68, %73, %74, %75, %76 in 0 : vector<8x768xf32>, vector<8x768xf32>, vector<8x768xf32>, vector<8x768xf32>, vector<8x768xf32>, vector<8x768xf32>, vector<8x768xf32>, vector<8x768xf32>, vector<8x768xf32> -> vector<72x768xf32>
    %78 = arith.truncf %77 : vector<72x768xf32> to vector<72x768xbf16>
    %c2 = arith.constant 2 : index
    %c0_35 = arith.constant 0 : index
    %c0_36 = arith.constant 0 : index
    %79 = vector.load %arg3[%c2, %c0_35, %c0_36] : memref<5x8x72xbf16, #tpu.memory_space<vmem>>, vector<1x8x72xbf16>
    %80 = vector.shape_cast %79 : vector<1x8x72xbf16> to vector<8x72xbf16>
    %cst_37 = arith.constant dense<0.000000e+00> : vector<8x768xf32>
    %81 = tpu.matmul %80, %78, %cst_37 {dimension_numbers = #tpu.dot_dimension_numbers<[1], [0], [0], [1], [0, 0, 1, 1], [], []>} : vector<8x72xbf16>, vector<72x768xbf16>, vector<8x768xf32> -> vector<8x768xf32>
    %c19_i32_38 = arith.constant 19 : i32
    %82 = tpu.dynamic_rotate %48 by %c19_i32_38 dim 1 : vector<8x768xf32>, i32 -> vector<8x768xf32>
    %c18_i32_39 = arith.constant 18 : i32
    %83 = tpu.dynamic_rotate %48 by %c18_i32_39 dim 1 : vector<8x768xf32>, i32 -> vector<8x768xf32>
    %c17_i32_40 = arith.constant 17 : i32
    %84 = tpu.dynamic_rotate %48 by %c17_i32_40 dim 1 : vector<8x768xf32>, i32 -> vector<8x768xf32>
    %c1_i32_41 = arith.constant 1 : i32
    %85 = tpu.dynamic_rotate %48 by %c1_i32_41 dim 1 : vector<8x768xf32>, i32 -> vector<8x768xf32>
    %c767_i32_42 = arith.constant 767 : i32
    %86 = tpu.dynamic_rotate %48 by %c767_i32_42 dim 1 : vector<8x768xf32>, i32 -> vector<8x768xf32>
    %c751_i32_43 = arith.constant 751 : i32
    %87 = tpu.dynamic_rotate %48 by %c751_i32_43 dim 1 : vector<8x768xf32>, i32 -> vector<8x768xf32>
    %c750_i32_44 = arith.constant 750 : i32
    %88 = tpu.dynamic_rotate %48 by %c750_i32_44 dim 1 : vector<8x768xf32>, i32 -> vector<8x768xf32>
    %c749_i32_45 = arith.constant 749 : i32
    %89 = tpu.dynamic_rotate %48 by %c749_i32_45 dim 1 : vector<8x768xf32>, i32 -> vector<8x768xf32>
    %90 = tpu.concatenate %82, %83, %84, %85, %48, %86, %87, %88, %89 in 0 : vector<8x768xf32>, vector<8x768xf32>, vector<8x768xf32>, vector<8x768xf32>, vector<8x768xf32>, vector<8x768xf32>, vector<8x768xf32>, vector<8x768xf32>, vector<8x768xf32> -> vector<72x768xf32>
    %91 = arith.truncf %90 : vector<72x768xf32> to vector<72x768xbf16>
    %c3 = arith.constant 3 : index
    %c0_46 = arith.constant 0 : index
    %c0_47 = arith.constant 0 : index
    %92 = vector.load %arg3[%c3, %c0_46, %c0_47] : memref<5x8x72xbf16, #tpu.memory_space<vmem>>, vector<1x8x72xbf16>
    %93 = vector.shape_cast %92 : vector<1x8x72xbf16> to vector<8x72xbf16>
    %cst_48 = arith.constant dense<0.000000e+00> : vector<8x768xf32>
    %94 = tpu.matmul %93, %91, %cst_48 {dimension_numbers = #tpu.dot_dimension_numbers<[1], [0], [0], [1], [0, 0, 1, 1], [], []>} : vector<8x72xbf16>, vector<72x768xbf16>, vector<8x768xf32> -> vector<8x768xf32>
    %95 = arith.addf %81, %94 : vector<8x768xf32>
    %96 = vector.extract_strided_slice %6 {offsets = [0, 2], sizes = [8, 1], strides = [1, 1]} : vector<8x4xf32> to vector<8x1xf32>
    %97 = vector.broadcast %96 : vector<8x1xf32> to vector<8x768xf32>
    %98 = arith.addf %95, %97 : vector<8x768xf32>
    %cst_49 = arith.constant 0.000000e+00 : f32
    %99 = vector.broadcast %cst_49 : f32 to vector<8x768xf32>
    %100 = arith.maximumf %98, %99 : vector<8x768xf32>
    %101 = vector.broadcast %1 : vector<1x768xf32> to vector<8x768xf32>
    %102 = arith.mulf %100, %101 : vector<8x768xf32>
    %c19_i32_50 = arith.constant 19 : i32
    %103 = tpu.dynamic_rotate %102 by %c19_i32_50 dim 1 : vector<8x768xf32>, i32 -> vector<8x768xf32>
    %c18_i32_51 = arith.constant 18 : i32
    %104 = tpu.dynamic_rotate %102 by %c18_i32_51 dim 1 : vector<8x768xf32>, i32 -> vector<8x768xf32>
    %c17_i32_52 = arith.constant 17 : i32
    %105 = tpu.dynamic_rotate %102 by %c17_i32_52 dim 1 : vector<8x768xf32>, i32 -> vector<8x768xf32>
    %c1_i32_53 = arith.constant 1 : i32
    %106 = tpu.dynamic_rotate %102 by %c1_i32_53 dim 1 : vector<8x768xf32>, i32 -> vector<8x768xf32>
    %c767_i32_54 = arith.constant 767 : i32
    %107 = tpu.dynamic_rotate %102 by %c767_i32_54 dim 1 : vector<8x768xf32>, i32 -> vector<8x768xf32>
    %c751_i32_55 = arith.constant 751 : i32
    %108 = tpu.dynamic_rotate %102 by %c751_i32_55 dim 1 : vector<8x768xf32>, i32 -> vector<8x768xf32>
    %c750_i32_56 = arith.constant 750 : i32
    %109 = tpu.dynamic_rotate %102 by %c750_i32_56 dim 1 : vector<8x768xf32>, i32 -> vector<8x768xf32>
    %c749_i32_57 = arith.constant 749 : i32
    %110 = tpu.dynamic_rotate %102 by %c749_i32_57 dim 1 : vector<8x768xf32>, i32 -> vector<8x768xf32>
    %111 = tpu.concatenate %103, %104, %105, %106, %102, %107, %108, %109, %110 in 0 : vector<8x768xf32>, vector<8x768xf32>, vector<8x768xf32>, vector<8x768xf32>, vector<8x768xf32>, vector<8x768xf32>, vector<8x768xf32>, vector<8x768xf32>, vector<8x768xf32> -> vector<72x768xf32>
    %112 = arith.truncf %111 : vector<72x768xf32> to vector<72x768xbf16>
    %c4 = arith.constant 4 : index
    %c0_58 = arith.constant 0 : index
    %c0_59 = arith.constant 0 : index
    %113 = vector.load %arg3[%c4, %c0_58, %c0_59] : memref<5x8x72xbf16, #tpu.memory_space<vmem>>, vector<1x8x72xbf16>
    %114 = vector.shape_cast %113 : vector<1x8x72xbf16> to vector<8x72xbf16>
    %cst_60 = arith.constant dense<0.000000e+00> : vector<8x768xf32>
    %115 = tpu.matmul %114, %112, %cst_60 {dimension_numbers = #tpu.dot_dimension_numbers<[1], [0], [0], [1], [0, 0, 1, 1], [], []>} : vector<8x72xbf16>, vector<72x768xbf16>, vector<8x768xf32> -> vector<8x768xf32>
    %116 = vector.extract_strided_slice %6 {offsets = [0, 3], sizes = [8, 1], strides = [1, 1]} : vector<8x4xf32> to vector<8x1xf32>
    %117 = vector.broadcast %116 : vector<8x1xf32> to vector<8x768xf32>
    %118 = arith.addf %115, %117 : vector<8x768xf32>
    %cst_61 = arith.constant 0.000000e+00 : f32
    %119 = vector.broadcast %cst_61 : f32 to vector<8x768xf32>
    %120 = arith.maximumf %118, %119 : vector<8x768xf32>
    %121 = vector.broadcast %1 : vector<1x768xf32> to vector<8x768xf32>
    %122 = arith.mulf %120, %121 : vector<8x768xf32>
    %c0_62 = arith.constant 0 : index
    %c0_63 = arith.constant 0 : index
    %c0_64 = arith.constant 0 : index
    %123 = vector.load %arg5[%c0_62, %c0_63, %c0_64] : memref<1x8x768xf32, #tpu.memory_space<vmem>>, vector<1x8x768xf32>
    %124 = vector.shape_cast %123 : vector<1x8x768xf32> to vector<8x768xf32>
    %125 = vector.shape_cast %122 : vector<8x768xf32> to vector<1x8x768xf32>
    tpu.vector_store %arg5[%c0_62, %c0_63, %c0_64], %125 {strides = array<i32>} : memref<1x8x768xf32, #tpu.memory_space<vmem>>, vector<1x8x768xf32>,
    return
  }
  func.func @transform_0(%arg0: i32) -> (i32, i32) {
    %c0_i32 = arith.constant 0 : i32
    %c0_i32_0 = arith.constant 0 : i32
    %c0_i32_1 = arith.constant 0 : i32
    return %c0_i32, %c0_i32_0 : i32, i32
  }
  func.func @transform_1(%arg0: i32) -> (i32, i32, i32) {
    %c0_i32 = arith.constant 0 : i32
    %c0_i32_0 = arith.constant 0 : i32
    %c0_i32_1 = arith.constant 0 : i32
    return %arg0, %c0_i32, %c0_i32_0 : i32, i32, i32
  }
  func.func @transform_2(%arg0: i32) -> (i32, i32, i32) {
    %c0_i32 = arith.constant 0 : i32
    %c0_i32_0 = arith.constant 0 : i32
    %c0_i32_1 = arith.constant 0 : i32
    %c0_i32_2 = arith.constant 0 : i32
    return %c0_i32, %c0_i32_0, %c0_i32_1 : i32, i32, i32
  }
  func.func @transform_3(%arg0: i32) -> (i32, i32) {
    %c0_i32 = arith.constant 0 : i32
    %c0_i32_0 = arith.constant 0 : i32
    %c0_i32_1 = arith.constant 0 : i32
    return %c0_i32, %c0_i32_0 : i32, i32
  }
  func.func @transform_4(%arg0: i32) -> (i32, i32, i32) {
    %c0_i32 = arith.constant 0 : i32
    %c0_i32_0 = arith.constant 0 : i32
    %c0_i32_1 = arith.constant 0 : i32
    return %arg0, %c0_i32, %c0_i32_0 : i32, i32, i32
  }
}

</mosaic_0001>

<bundles_post_ra>
// kernel: tpu_custom_call.1
= control target key start
LH: loop header
LB: loop body
LE: loop exit
PB: predicated region body
PF: predicated region fallthrough
CT: control target
= control target key end

     0   :  { %6 = vsyncpa [#allocation3], 0  ;;  %s128_s0 = inlined_call_operand.hbm [shape: s32[8,128], index: 0, kind: input, shape index: {}]   ;;  %s129_s1 = inlined_call_operand.hbm [shape: s32[8,128], index: 1, kind: output, shape index: {}]  }
   0x1   :  { %7 = vsyncpa [#allocation4], 0  ;;  %s91_s6 = smov [#allocation2]   ;;  %s43_s10 = scalar_lea.hbm %s128_s0, 128 }
   0x2   :  { %s14_s7 = sshll.u32 %s91_s6, 4  ;;  %p44_p0 = scmp.ne.s32.totalorder %s128_s0, %s43_s10  ;;  %s15_s7 = int_to_ptr.vmem [resolvable:$true] %s14_s7 }
   0x3   :  { %p47_p1 = scmp.lt.u32.totalorder %s43_s10, %s128_s0 }
   0x5   :  { %p49_p2 = pnand %p47_p1, %p44_p0 }
   0x7   :  { %52 = shalt.err (!%p49_p2)
}
   0x8   :  { %s53_s15 = scalar_lea.vmem %s15_s7, 128  ;;  %p58_p4 = scmp.lt.s32.totalorder %s15_s7, %s15_s7 }
   0x9   :  { %p54_p3 = scmp.ne.s32.totalorder %s15_s7, %s53_s15  ;;  %p59_p5 = scmp.lt.s32.totalorder %s53_s15, %s53_s15 }
   0xb   :  { %p60_p6 = por %p59_p5, %p58_p4 }
   0xd   :  { %p61_p7 = pnand %p60_p6, %p54_p3 }
   0xf   :  { %64 = shalt.err (!%p61_p7)
}
  0x10   :  { %17 = dma.hbm_to_vmem [thread:$0]  %s128_s0, 128, %s15_s7, [#allocation3]  }
  0x11   :  { %87 = dma.done.wait [#allocation3], 128  }
  0x12   :  { %88 = vsyncadd [#allocation3], 4294967168  ;;  %v21_v0 = vld [vmem:[#allocation2] sm:$0xff]  ;;  %s92_s18 = smov 1   ;;  %s93_s19 = smov [#allocation5]  }
  0x13   :  { %22 = vrot.lane.b32.xlu0 %v21_v0, %s92_s18  ;;  %s31_s20 = sshll.u32 %s93_s19, 4  ;;  %s32_s20 = int_to_ptr.vmem [resolvable:$true] %s31_s20 }
  0x14   :  { %s65_s21 = scalar_lea.vmem %s32_s20, 128  ;;  %p70_p9 = scmp.lt.s32.totalorder %s32_s20, %s32_s20 }
  0x15   :  { %p66_p8 = scmp.ne.s32.totalorder %s32_s20, %s65_s21  ;;  %p71_p10 = scmp.lt.s32.totalorder %s65_s21, %s65_s21 }
  0x17   :  { %p72_p11 = por %p71_p10, %p70_p9 }
  0x19   :  { %p73_p12 = pnand %p72_p11, %p66_p8 }
  0x85   :  { %v23_v1 = vpop.permute.xlu0 %22 }
  0x86   :  { %24 = vst [vmem:[#allocation5] sm:$0xff] %v23_v1 }
  0x87   :  { %76 = shalt.err (!%p73_p12)
}
  0x88   :  { %s77_s0 = scalar_lea.hbm %s129_s1, 128 }
  0x89   :  { %p78_p13 = scmp.ne.s32.totalorder %s129_s1, %s77_s0  ;;  %p81_p0 = scmp.lt.u32.totalorder %s77_s0, %s129_s1 }
  0x8b   :  { %p83_p1 = pnand %p81_p0, %p78_p13 }
  0x8d   :  { %86 = shalt.err (!%p83_p1)
}
  0x8e   :  { %34 = dma.vmem_to_hbm [thread:$0]  %s32_s20, 128, %s129_s1, [#allocation4]  }
  0x8f   :  { %89 = dma.done.wait [#allocation4], 128  }
  0x90   :  { %90 = vsyncadd [#allocation4], 4294967168 }
  0x91   :  { %38 = vsyncpa [#allocation3], 1 }
  0x92   :  { %39 = vsyncpa [#allocation4], 1 }

// kernel: tpu_custom_call.1
= control target key start
LH: loop header
LB: loop body
LE: loop exit
PB: predicated region body
PF: predicated region fallthrough
CT: control target
= control target key end

     0   :  { %9 = vsyncpa [#allocation3], 0  ;;  %s4463_s0 = inlined_call_operand.hbm [shape: f32[8,768], index: 0, kind: input, shape index: {}]   ;;  %s4464_s1 = inlined_call_operand.hbm [shape: f32[1,8,768], index: 1, kind: input, shape index: {}]   ;;  %s4465_s2 = inlined_call_operand.hbm [shape: bf16[5,8,72], index: 2, kind: input, shape index: {}]   ;;  %s4466_s3 = inlined_call_operand.vmem [shape: f32[8,4], index: 3, kind: input, shape index: {}]   ;;  %s4467_s4 = inlined_call_operand.hbm [shape: f32[1,8,768], index: 4, kind: output, shape index: {}]  }
   0x1   :  { %10 = vsyncpa [#allocation6], 0 }
   0x2   :  { %11 = vsyncpa [#allocation4], 0  ;;  %s2617_s15 = smov [#allocation5]   ;;  %s2618_s17 = smov [#allocation2]  }
   0x3   :  { %s28_s16 = sshll.u32 %s2617_s15, 4  ;;  %s18_s18 = sshll.u32 %s2618_s17, 4  ;;  %s29_s16 = int_to_ptr.vmem [resolvable:$true] %s28_s16  ;;  %s19_s18 = int_to_ptr.vmem [resolvable:$true] %s18_s18 }
   0x4   :  { %s2523_s21 = scalar_lea.hbm %s4464_s1, 768 }
   0x5   :  { %p2524_p0 = scmp.ne.s32.totalorder %s4464_s1, %s2523_s21  ;;  %p2527_p1 = scmp.lt.u32.totalorder %s2523_s21, %s4464_s1 }
   0x7   :  { %p2529_p2 = pnand %p2527_p1, %p2524_p0 }
   0x9   :  { %2532 = shalt.err (!%p2529_p2)
}
   0xa   :  { %s2533_s26 = scalar_lea.vmem %s29_s16, 768  ;;  %p2538_p4 = scmp.lt.s32.totalorder %s29_s16, %s29_s16 }
   0xb   :  { %p2534_p3 = scmp.ne.s32.totalorder %s29_s16, %s2533_s26  ;;  %p2539_p5 = scmp.lt.s32.totalorder %s2533_s26, %s2533_s26 }
   0xd   :  { %p2540_p6 = por %p2539_p5, %p2538_p4 }
   0xf   :  { %p2541_p7 = pnand %p2540_p6, %p2534_p3 }
  0x11   :  { %2544 = shalt.err (!%p2541_p7)
}
  0x12   :  { %31 = dma.hbm_to_vmem [thread:$0]  %s4464_s1, 768, %s29_s16, [#allocation6]  }
  0x13   :  { %s2545_s5 = scalar_lea.hbm %s4463_s0, 768 }
  0x14   :  { %p2546_p8 = scmp.ne.s32.totalorder %s4463_s0, %s2545_s5  ;;  %p2549_p9 = scmp.lt.u32.totalorder %s2545_s5, %s4463_s0 }
  0x16   :  { %p2551_p10 = pnand %p2549_p9, %p2546_p8 }
  0x18   :  { %2554 = shalt.err (!%p2551_p10)
}
  0x19   :  { %s2555_s10 = scalar_lea.vmem %s19_s18, 768  ;;  %p2560_p12 = scmp.lt.s32.totalorder %s19_s18, %s19_s18 }
  0x1a   :  { %p2556_p11 = scmp.ne.s32.totalorder %s19_s18, %s2555_s10  ;;  %p2561_p13 = scmp.lt.s32.totalorder %s2555_s10, %s2555_s10 }
  0x1c   :  { %p2562_p0 = por %p2561_p13, %p2560_p12 }
  0x1e   :  { %p2563_p1 = pnand %p2562_p0, %p2556_p11 }
  0x20   :  { %2566 = shalt.err (!%p2563_p1)
}
  0x21   :  { %21 = dma.hbm_to_vmem [thread:$0]  %s4463_s0, 768, %s19_s18, [#allocation3]  }
  0x22   :  { %s2619_s12 = smov [#allocation7]   ;;  %s2567_s16 = scalar_lea.hbm %s4465_s2, 320 }
  0x23   :  { %s37_s13 = sshll.u32 %s2619_s12, 4  ;;  %p2568_p2 = scmp.ne.s32.totalorder %s4465_s2, %s2567_s16  ;;  %s38_s13 = int_to_ptr.vmem [resolvable:$true] %s37_s13 }
  0x24   :  { %p2571_p3 = scmp.lt.u32.totalorder %s2567_s16, %s4465_s2 }
  0x26   :  { %p2573_p4 = pnand %p2571_p3, %p2568_p2 }
  0x28   :  { %2576 = shalt.err (!%p2573_p4)
}
  0x29   :  { %s2577_s22 = scalar_lea.vmem %s38_s13, 320  ;;  %p2582_p6 = scmp.lt.s32.totalorder %s38_s13, %s38_s13 }
  0x2a   :  { %p2578_p5 = scmp.ne.s32.totalorder %s38_s13, %s2577_s22  ;;  %p2583_p7 = scmp.lt.s32.totalorder %s2577_s22, %s2577_s22 }
  0x2c   :  { %p2584_p8 = por %p2583_p7, %p2582_p6 }
  0x2e   :  { %p2585_p9 = pnand %p2584_p8, %p2578_p5 }
  0x30   :  { %2588 = shalt.err (!%p2585_p9)
}
  0x31   :  { %s2620_s0 = smov 64   ;;  %s2621_s18 = smov 4  }
  0x32   :  { %43 = dma.hbm_to_vmem [thread:$0]  %s4465_s2, 320, %s38_s13, [#allocation6], %s2620_s0, %s2620_s0, %s2621_s18  }
  0x33   :  { %2611 = dma.done.wait [#allocation3], 768  }
  0x34   :  { %2612 = vsyncadd [#allocation3], 4294966528 }
  0x35   :  { %2613 = dma.done.wait [#allocation6], 1088  }
  0x36   :  { %2614 = vsyncadd [#allocation6], 4294966208  ;;  %v2696_v0 = vld [vmem:[#allocation5 + $0x20] sm:$0xff]  ;;  %v2698_v1 = vld [vmem:[#allocation5 + $0x28] sm:$0xff]  ;;  %s2622_s25 = smov 19   ;;  %s2623_s2 = smov 18   ;;  %v81_v13 = vlaneseq }
  0x37   :  { %v2700_v2 = vld [vmem:[#allocation5] sm:$0xff]  ;;  %v2047_v3 = vpack.i.bf16 %v2696_v0, %v2698_v1  ;;  %v2704_v4 = vld [vmem:[#allocation5 + $0x8] sm:$0xff]  ;;  %s2624_s26 = smov 1   ;;  %s2625_s27 = smov 17   ;;  %v2714_v6 = vld [vmem:[#allocation5 + $0x10] sm:$0xff]  ;;  %v4471_v8 = vmov 0   ;;  %v2132_v11 = vpack.i.bf16 %v2698_v1, %v2696_v0 }
  0x38   :  { %v2037_v5 = vpack.i.bf16 %v2704_v4, %v2700_v2  ;;  %v2077_v7 = vpack.i.bf16 %v2714_v6, %v2704_v4  ;;  %s2626_s28 = smov 127   ;;  %s2627_s29 = smov 110   ;;  %314 = vmatprep.mubr.bf16.mxu0 %v4471_v8  ;;  %v2730_v9 = vld [vmem:[#allocation5 + $0x18] sm:$0xff]  ;;  %355 = vmatprep.mubr.bf16.mxu1 %v4471_v8  ;;  %v2760_v12 = vld [vmem:[%s4466_s3] sm:$0xff]  ;;  %v2768_v16 = vand.u32 127, %v81_v13  ;;  %vm263_vm8 = vcmask 1043456  }
  0x39   :  { %2048 = vrot.lane.b32.xlu1 %v2047_v3, %s2622_s25  ;;  %s2628_s30 = smov 111   ;;  %2137 = vset.pattern.permute.xlu0 %v4471_v8  ;;  %s2630_s5 = smov 109   ;;  %v2102_v10 = vpack.i.bf16 %v2714_v6, %v2730_v9  ;;  %vm259_vm9 = vcmask 588800  }
  0x3a   :  { %2038 = vrot.lane.b32.xlu0 %v2037_v5, %s2622_s25  ;;  %vm83_vm0 = vcmp.lt.s32.totalorder %v2768_v16, 19  ;;  %vm102_vm1 = vcmp.lt.s32.totalorder %v2768_v16, 18  ;;  %vm121_vm2 = vcmp.lt.s32.totalorder %v2768_v16, 17  ;;  %vm140_vm3 = vcmp.lt.s32.totalorder %v2768_v16, 1 }
  0x3b   :  { %vm159_vm4 = vcmp.lt.s32.totalorder %v2768_v16, 127  ;;  %vm197_vm5 = vcmp.lt.s32.totalorder %v2768_v16, 110  ;;  %vm178_vm6 = vcmp.lt.s32.totalorder %v2768_v16, 111  ;;  %vm216_vm7 = vcmp.lt.s32.totalorder %v2768_v16, 109 }
  0x3d   :  { %2053 = vrot.lane.b32.xlu1 %v2047_v3, %s2623_s2 }
  0x3e   :  { %2043 = vrot.lane.b32.xlu0 %v2037_v5, %s2623_s2 }
  0x41   :  { %2063 = vrot.lane.b32.xlu1 %v2037_v5, %s2624_s26 }
  0x42   :  { %2058 = vrot.lane.b32.xlu0 %v2037_v5, %s2625_s27 }
  0x45   :  { %2073 = vrot.lane.b32.xlu1 %v2047_v3, %s2624_s26 }
  0x46   :  { %2068 = vrot.lane.b32.xlu0 %v2047_v3, %s2625_s27 }
  0x49   :  { %147 = vrot.lane.b32.xlu1 %v2700_v2, %s2626_s28 }
  0x4a   :  { %2078 = vrot.lane.b32.xlu0 %v2077_v7, %s2626_s28 }
  0x4d   :  { %2088 = vrot.lane.b32.xlu1 %v2077_v7, %s2627_s29 }
  0x4e   :  { %2083 = vrot.lane.b32.xlu0 %v2077_v7, %s2628_s30 }
  0x51   :  { %185 = vrot.lane.b32.xlu1 %v2700_v2, %s2627_s29 }
  0x52   :  { %166 = vrot.lane.b32.xlu0 %v2700_v2, %s2628_s30 }
  0x55   :  { %208 = vrot.lane.b32.xlu1 %v2714_v6, %s2630_s5 }
  0x56   :  { %2093 = vrot.lane.b32.xlu0 %v2037_v5, %s2630_s5 }
  0x59   :  { %2103 = vrot.lane.b32.xlu1 %v2102_v10, %s2623_s2 }
  0x5a   :  { %2098 = vrot.lane.b32.xlu0 %v2102_v10, %s2622_s25 }
  0x5d   :  { %2113 = vrot.lane.b32.xlu1 %v2102_v10, %s2624_s26 }
  0x5e   :  { %2108 = vrot.lane.b32.xlu0 %v2102_v10, %s2625_s27 }
  0x61   :  { %2123 = vrot.lane.b32.xlu1 %v2047_v3, %s2628_s30 }
  0x62   :  { %2118 = vrot.lane.b32.xlu0 %v2047_v3, %s2626_s28 }
  0x65   :  { %153 = vrot.lane.b32.xlu1 %v2730_v9, %s2626_s28 }
  0x66   :  { %2128 = vrot.lane.b32.xlu0 %v2047_v3, %s2627_s29 }
  0x69   :  { %172 = vrot.lane.b32.xlu1 %v2730_v9, %s2628_s30 }
  0x6a   :  { %2133 = vrot.lane.b32.xlu0 %v2132_v11, %s2630_s5 }
  0x6d   :  { %210 = vrot.lane.b32.xlu1 %v2730_v9, %s2630_s5 }
  0x6e   :  { %191 = vrot.lane.b32.xlu0 %v2730_v9, %s2627_s29 }
  0x72   :  { %256 = vperm.xlu0 %2137, %v2760_v12  }
  0xab   :  { %v2763_v14 = vpop.permute.xlu1 %2048 }
  0xac   :  { %v2765_v15 = vpop.permute.xlu0 %2038  ;;  %v2050_v17 = vunpack.i.l.bf16 %v2763_v14 }
  0xad   :  { %v2041_v18 = vunpack.i.h.bf16 %v2765_v15  ;;  %v2040_v19 = vunpack.i.l.bf16 %v2765_v15 }
  0xaf   :  { %v2773_v20 = vpop.permute.xlu1 %2053  ;;  %v88_v26 = vsel %vm83_vm0, %v2040_v19, %v2041_v18  ;;  %v89_v28 = vsel %vm83_vm0, %v2050_v17, %v2040_v19 }
  0xb0   :  { %v2055_v21 = vunpack.i.l.bf16 %v2773_v20  ;;  %v2776_v22 = vpop.permute.xlu0 %2043  ;;  %v2056_v3 = vunpack.i.h.bf16 %v2773_v20 }
  0xb1   :  { %v2046_v23 = vunpack.i.h.bf16 %v2776_v22  ;;  %v2045_v24 = vunpack.i.l.bf16 %v2776_v22 }
  0xb3   :  { %v2784_v25 = vpop.permute.xlu1 %2063  ;;  %v107_v27 = vsel %vm102_vm1, %v2045_v24, %v2046_v23  ;;  %v108_v29 = vsel %vm102_vm1, %v2055_v21, %v2045_v24 }
  0xb4   :  { %v2066_v30 = vunpack.i.h.bf16 %v2784_v25  ;;  %v2065_v31 = vunpack.i.l.bf16 %v2784_v25  ;;  %v2804_v32 = vpop.permute.xlu0 %2058  ;;  %v224_v33 = vpack.c.bf16 %v107_v27, %v88_v26  ;;  %v223_v34 = vpack.c.bf16 %v108_v29, %v89_v28 }
  0xb5   :  { %v2061_v35 = vunpack.i.h.bf16 %v2804_v32  ;;  %v2060_v36 = vunpack.i.l.bf16 %v2804_v32  ;;  %v103_v27 = vsel %vm102_vm1, %v2056_v3, %v2055_v21 }
  0xb6   :  { %282 = vmatprep.subr.bf16.mxu0 %v224_v33  ;;  %v145_v37 = vsel %vm140_vm3, %v2065_v31, %v2066_v30 }
  0xb7   :  { %283 = vmatpush1.bf16.msra.mxu0 %v223_v34  ;;  %v2812_v38 = vpop.permute.xlu1 %2073  ;;  %v126_v39 = vsel %vm121_vm2, %v2060_v36, %v2061_v35 }
  0xb8   :  { %v2075_v40 = vunpack.i.l.bf16 %v2812_v38  ;;  %v2819_v41 = vpop.permute.xlu0 %2068  ;;  %v230_v42 = vpack.c.bf16 %v145_v37, %v126_v39  ;;  %v2076_v28 = vunpack.i.h.bf16 %v2812_v38 }
  0xb9   :  { %v2070_v43 = vunpack.i.l.bf16 %v2819_v41  ;;  %v2071_v29 = vunpack.i.h.bf16 %v2819_v41 }
  0xba   :  { %284 = vmatprep.subr.bf16.mxu0 %v230_v42  ;;  %v146_v44 = vsel %vm140_vm3, %v2075_v40, %v2065_v31 }
  0xbb   :  { %v2826_v45 = vpop.permute.xlu1 %147  ;;  %v127_v46 = vsel %vm121_vm2, %v2070_v43, %v2060_v36 }
  0xbc   :  { %v2830_v47 = vpop.permute.xlu0 %2078  ;;  %v229_v48 = vpack.c.bf16 %v146_v44, %v127_v46  ;;  %v122_v46 = vsel %vm121_vm2, %v2071_v29, %v2070_v43 }
  0xbd   :  { %v2081_v49 = vunpack.i.h.bf16 %v2830_v47  ;;  %v2080_v50 = vunpack.i.l.bf16 %v2830_v47 }
  0xbe   :  { %285 = vmatpush1.bf16.msra.mxu0 %v229_v48  ;;  %v141_v48 = vsel %vm140_vm3, %v2076_v28, %v2075_v40 }
  0xbf   :  { %v2836_v51 = vpop.permute.xlu1 %2088  ;;  %v163_v52 = vsel %vm159_vm4, %v2080_v50, %v2081_v49  ;;  %v164_v53 = vsel %vm159_vm4, %v2826_v45, %v2080_v50 }
  0xc0   :  { %v2091_v54 = vunpack.i.h.bf16 %v2836_v51  ;;  %v2090_v55 = vunpack.i.l.bf16 %v2836_v51  ;;  %v2848_v56 = vpop.permute.xlu0 %2083  ;;  %v236_v57 = vpack.c.bf16 %v163_v52, %v2704_v4  ;;  %v235_v58 = vpack.c.bf16 %v164_v53, %v2700_v2 }
  0xc1   :  { %v2086_v59 = vunpack.i.h.bf16 %v2848_v56  ;;  %v2085_v60 = vunpack.i.l.bf16 %v2848_v56  ;;  %v2051_v2 = vunpack.i.h.bf16 %v2763_v14 }
  0xc2   :  { %286 = vmatprep.subr.bf16.mxu0 %v236_v57  ;;  %v201_v61 = vsel %vm197_vm5, %v2090_v55, %v2091_v54 }
  0xc3   :  { %287 = vmatpush1.bf16.msra.mxu0 %v235_v58  ;;  %v2858_v62 = vpop.permute.xlu1 %185  ;;  %v182_v63 = vsel %vm178_vm6, %v2085_v60, %v2086_v59  ;;  %v84_v26 = vsel %vm83_vm0, %v2051_v2, %v2050_v17 }
  0xc4   :  { %v202_v4 = vsel %vm197_vm5, %v2858_v62, %v2090_v55  ;;  %v2869_v5 = vpop.permute.xlu0 %166  ;;  %v242_v7 = vpack.c.bf16 %v201_v61, %v182_v63  ;;  %v228_v20 = vpack.c.bf16 %v103_v27, %v84_v26  ;;  %v2916_v55 = vld [vmem:[#allocation7] sm:$0xf] }
  0xc5   :  { %v183_v10 = vsel %vm178_vm6, %v2869_v5, %v2085_v60 }
  0xc6   :  { %288 = vmatprep.subr.bf16.mxu0 %v242_v7  ;;  %v241_v11 = vpack.c.bf16 %v202_v4, %v183_v10  ;;  %v234_v7 = vpack.c.bf16 %v141_v48, %v122_v46 }
  0xc7   :  { %v2874_v19 = vpop.permute.xlu1 %208 }
  0xc8   :  { %v2876_v24 = vpop.permute.xlu0 %2093  ;;  %289 = vmatpush1.bf16.msra.mxu0 %v241_v11 }
  0xc9   :  { %v2096_v31 = vunpack.i.h.bf16 %v2876_v24  ;;  %v2095_v33 = vunpack.i.l.bf16 %v2876_v24 }
  0xcb   :  { %v2104_v34 = vpop.permute.xlu1 %2103  ;;  %v220_v14 = vsel %vm216_vm7, %v2096_v31, %v2874_v19  ;;  %v221_v17 = vsel %vm216_vm7, %v2095_v33, %v2096_v31 }
  0xcc   :  { %v2106_v21 = vunpack.i.h.bf16 %v2104_v34  ;;  %v2105_v36 = vunpack.i.l.bf16 %v2104_v34  ;;  %v2099_v37 = vpop.permute.xlu0 %2098  ;;  %v248_v39 = vpack.c.bf16 %v220_v14, %v220_v14  ;;  %v247_v41 = vpack.c.bf16 %v221_v17, %v221_v17 }
  0xcd   :  { %v2101_v42 = vunpack.i.h.bf16 %v2099_v37  ;;  %v2100_v44 = vunpack.i.l.bf16 %v2099_v37 }
  0xce   :  { %v104_v50 = vsel %vm102_vm1, %v2105_v36, %v2056_v3  ;;  %1989 = vmatprep.subr.msk.bf16.mxu0 %vm263_vm8, %v248_v39  ;;  %v265_v52 = vsel %vm263_vm8, %v247_v41, 0  ;;  %v105_v53 = vsel %vm102_vm1, %v2106_v21, %v2105_v36  ;;  %v106_v43 = vsel %vm102_vm1, %v2046_v23, %v2106_v21 }
  0xcf   :  { %v85_v38 = vsel %vm83_vm0, %v2100_v44, %v2051_v2  ;;  %291 = vmatpush1.bf16.msra.mxu0 %v265_v52  ;;  %v2114_v40 = vpop.permute.xlu1 %2113  ;;  %v86_v57 = vsel %vm83_vm0, %v2101_v42, %v2100_v44  ;;  %v87_v58 = vsel %vm83_vm0, %v2041_v18, %v2101_v42 }
  0xd0   :  { %v2116_v22 = vunpack.i.h.bf16 %v2114_v40  ;;  %v2115_v60 = vunpack.i.l.bf16 %v2114_v40  ;;  %v2109_v61 = vpop.permute.xlu0 %2108  ;;  %364 = vmatprep.subr.bf16.mxu0 %v228_v20  ;;  %v226_v23 = vpack.c.bf16 %v105_v53, %v86_v57  ;;  %v225_v63 = vpack.c.bf16 %v106_v43, %v87_v58 }
  0xd1   :  { %v2111_v2 = vunpack.i.h.bf16 %v2109_v61  ;;  %v2110_v3 = vunpack.i.l.bf16 %v2109_v61  ;;  %v227_v4 = vpack.c.bf16 %v104_v50, %v85_v38 }
  0xd2   :  { %v142_v10 = vsel %vm140_vm3, %v2115_v60, %v2076_v28  ;;  %1990 = vmatmul.mubr.msk.bf16.vlgmr.msra.gmra.mrb[0].mxu0 %vm259_vm9, %v2916_v55  ;;  %323 = vmatprep.subr.bf16.mxu1 %v226_v23  ;;  %v143_v15 = vsel %vm140_vm3, %v2116_v22, %v2115_v60  ;;  %v144_v18 = vsel %vm140_vm3, %v2066_v30, %v2116_v22 }
  0xd3   :  { %v123_v11 = vsel %vm121_vm2, %v2110_v3, %v2071_v29  ;;  %324 = vmatpush1.bf16.msra.mxu1 %v225_v63  ;;  %365 = vmatpush1.bf16.msra.mxu0 %v227_v4  ;;  %v2124_v26 = vpop.permute.xlu1 %2123  ;;  %v124_v27 = vsel %vm121_vm2, %v2111_v2, %v2110_v3  ;;  %v125_v28 = vsel %vm121_vm2, %v2061_v35, %v2111_v2 }
  0xd4   :  { %v2126_v31 = vunpack.i.h.bf16 %v2124_v26  ;;  %v2119_v34 = vpop.permute.xlu0 %2118  ;;  %366 = vmatprep.subr.bf16.mxu0 %v234_v7  ;;  %v232_v25 = vpack.c.bf16 %v143_v15, %v124_v27  ;;  %v231_v14 = vpack.c.bf16 %v144_v18, %v125_v28  ;;  %396 = vmatprep.mubr.bf16.mxu0 %v4471_v8  ;;  %v2125_v30 = vunpack.i.l.bf16 %v2124_v26  ;;  %v3005_v7 = vld [vmem:[#allocation2] sm:$0xff] }
  0xd5   :  { %v2121_v29 = vunpack.i.h.bf16 %v2119_v34  ;;  %v2120_v17 = vunpack.i.l.bf16 %v2119_v34  ;;  %v233_v20 = vpack.c.bf16 %v142_v10, %v123_v11  ;;  %v3007_v10 = vld [vmem:[#allocation2 + $0x8] sm:$0xff] }
  0xd6   :  { %325 = vmatprep.subr.bf16.mxu1 %v232_v25  ;;  %v179_v21 = vsel %vm178_vm6, %v2126_v31, %v2125_v30 }
  0xd7   :  { %v160_v32 = vsel %vm159_vm4, %v2121_v29, %v2120_v17  ;;  %326 = vmatpush1.bf16.msra.mxu1 %v231_v14  ;;  %367 = vmatpush1.bf16.msra.mxu0 %v233_v20  ;;  %v154_v35 = vpop.permute.xlu1 %153  ;;  %v165_v36 = vsel %vm159_vm4, %v2120_v17, %v2826_v45 }
  0xd8   :  { %v161_v37 = vsel %vm159_vm4, %v154_v35, %v2121_v29  ;;  %v162_v39 = vsel %vm159_vm4, %v2081_v49, %v154_v35  ;;  %v2129_v41 = vpop.permute.xlu0 %2128  ;;  %v240_v42 = vpack.c.bf16 %v165_v36, %v2698_v1  ;;  %v239_v44 = vpack.c.bf16 %v160_v32, %v2696_v0  ;;  %v3031_v32 = vld [vmem:[#allocation2 + $0x10] sm:$0xff] }
  0xd9   :  { %v2131_v46 = vunpack.i.h.bf16 %v2129_v41  ;;  %v2130_v48 = vunpack.i.l.bf16 %v2129_v41  ;;  %v238_v50 = vpack.c.bf16 %v161_v37, %v2730_v9  ;;  %v237_v52 = vpack.c.bf16 %v162_v39, %v2714_v6 }
  0xda   :  { %368 = vmatprep.subr.bf16.mxu0 %v240_v42  ;;  %v184_v49 = vsel %vm178_vm6, %v2125_v30, %v2869_v5  ;;  %v3036_v42 = vld [vmem:[#allocation2 + $0x28] sm:$0xff] }
  0xdb   :  { %v198_v45 = vsel %vm197_vm5, %v2131_v46, %v2130_v48  ;;  %369 = vmatpush1.bf16.msra.mxu0 %v239_v44  ;;  %v173_v47 = vpop.permute.xlu1 %172  ;;  %327 = vmatprep.subr.bf16.mxu1 %v238_v50  ;;  %v203_v0 = vsel %vm197_vm5, %v2130_v48, %v2858_v62 }
  0xdc   :  { %v2134_v1 = vpop.permute.xlu0 %2133  ;;  %328 = vmatpush1.bf16.msra.mxu1 %v237_v52  ;;  %v246_v9 = vpack.c.bf16 %v203_v0, %v184_v49  ;;  %v245_v53 = vpack.c.bf16 %v198_v45, %v179_v21  ;;  %v180_v62 = vsel %vm178_vm6, %v173_v47, %v2126_v31  ;;  %v181_v57 = vsel %vm178_vm6, %v2086_v59, %v173_v47 }
  0xdd   :  { %v2136_v6 = vunpack.i.h.bf16 %v2134_v1  ;;  %v2135_v43 = vunpack.i.l.bf16 %v2134_v1 }
  0xde   :  { %370 = vmatprep.subr.bf16.mxu0 %v246_v9  ;;  %v3055_v9 = vld [vmem:[#allocation2 + $0x18] sm:$0xff] }
  0xdf   :  { %371 = vmatpush1.bf16.msra.mxu0 %v245_v53  ;;  %v211_v38 = vpop.permute.xlu1 %210  ;;  %v222_v40 = vsel %vm216_vm7, %v2136_v6, %v2095_v33  ;;  %v217_v5 = vsel %vm216_vm7, %v2135_v43, %v2136_v6  ;;  %v3060_v6 = vld [vmem:[#allocation2 + $0x20] sm:$0xff] }
  0xe0   :  { %v192_v58 = vpop.permute.xlu0 %191  ;;  %v252_v22 = vpack.c.bf16 %v222_v40, %v222_v40  ;;  %v251_v60 = vpack.c.bf16 %v217_v5, %v217_v5  ;;  %v218_v24 = vsel %vm216_vm7, %v211_v38, %v2135_v43  ;;  %v219_v33 = vsel %vm216_vm7, %v2874_v19, %v211_v38 }
  0xe1   :  { %v199_v61 = vsel %vm197_vm5, %v192_v58, %v2131_v46  ;;  %v200_v56 = vsel %vm197_vm5, %v2091_v54, %v192_v58  ;;  %v250_v2 = vpack.c.bf16 %v218_v24, %v218_v24  ;;  %v249_v3 = vpack.c.bf16 %v219_v33, %v219_v33 }
  0xe2   :  { %1993 = vmatprep.subr.msk.bf16.mxu0 %vm263_vm8, %v252_v22  ;;  %v277_v59 = vsel %vm263_vm8, %v251_v60, 0  ;;  %v244_v23 = vpack.c.bf16 %v199_v61, %v180_v62  ;;  %v243_v63 = vpack.c.bf16 %v200_v56, %v181_v57  ;;  %v3002_v54 = vshrl.u32 %v81_v13, 7 }
  0xe3   :  { %373 = vmatpush1.bf16.msra.mxu0 %v277_v59  ;;  %v271_v51 = vsel %vm263_vm8, %v249_v3, 0  ;;  %v2631_v60 = vmov 1  }
  0xe4   :  { %329 = vmatprep.subr.bf16.mxu1 %v244_v23  ;;  %v413_v19 = vsub.s32 0, %v3002_v54  ;;  %2233 = vset.pattern.permute.xlu1 %v2631_v60 }
  0xe5   :  { %330 = vmatpush1.bf16.msra.mxu1 %v243_v63 }
  0xe6   :  { %1991 = vmatprep.subr.msk.bf16.mxu1 %vm263_vm8, %v250_v2  ;;  %1994 = vmatmul.mubr.msk.bf16.vlgmr.msra.gmra.mrb[4].mxu0 %vm259_vm9, %v2916_v55  ;;  %v3010_v11 = vrot.slane %v3005_v7, %v413_v19  ;;  %v3034_v39 = vrot.slane %v3031_v32, %v413_v19  ;;  %v3039_v52 = vrot.slane %v3036_v42, %v413_v19 }
  0xe7   :  { %715 = vmatprep.mubr.bf16.mxu0 %v4471_v8  ;;  %v3063_v38 = vrot.slane %v3055_v9, %v413_v19  ;;  %v3066_v5 = vrot.slane %v3060_v6, %v413_v19 }
  0xe9   :  { %332 = vmatpush1.bf16.msra.mxu1 %v271_v51 }
  0xec   :  { %1992 = vmatmul.mubr.msk.bf16.vlgmr.msra.gmra.mrb[0].mxu1 %vm259_vm9, %v2916_v55  ;;  %v3013_v55 = vrot.slane %v3007_v10, %v413_v19 }
  0xed   :  { %674 = vmatprep.mubr.bf16.mxu1 %v4471_v8 }
  0xf1   :  { %v257_v4 = vpop.permute.xlu0 %256 }
 0x1a5   :  { %v316_v15 = vpop.f32.mrb[0].mxu0 }
 0x1a6   :  { %v317_v18 = vadd.f32 %v316_v15, %v257_v4  ;;  %v318_v26 = vpop.f32.mrb[1].mxu0 }
 0x1a7   :  { %v319_v27 = vadd.f32 %v318_v26, %v257_v4  ;;  %v320_v28 = vpop.f32.mrb[2].mxu0 }
 0x1a8   :  { %v405_v13 = vmax.f32 %v317_v18, 0.0  ;;  %v321_v31 = vpop.f32.mrb[3].mxu0 }
 0x1a9   :  { %v406_v34 = vmax.f32 %v319_v27, 0.0 }
 0x1aa   :  { %v3016_v25 = vmul.f32 %v3010_v11, %v405_v13 }
 0x1ab   :  { %v3019_v14 = vmul.f32 %v3013_v55, %v406_v34 }
 0x1ac   :  { %513 = vrot.lane.b32.xlu1 %v3016_v25, %s2626_s28  ;;  %531 = vrot.lane.b32.xlu0 %v3016_v25, %s2628_s30 }
 0x1ad   :  { %v2138_v30 = vpack.i.bf16 %v3019_v14, %v3016_v25 }
 0x1b0   :  { %2139 = vrot.lane.b32.xlu1 %v2138_v30, %s2622_s25  ;;  %2149 = vrot.lane.b32.xlu0 %v2138_v30, %s2625_s27 }
 0x1b4   :  { %2144 = vrot.lane.b32.xlu1 %v2138_v30, %s2623_s2 }
 0x1b8   :  { %2154 = vrot.lane.b32.xlu1 %v2138_v30, %s2624_s26 }
 0x1b9   :  { %v398_v29 = vpop.f32.mrb[4].mxu0 }
 0x1ba   :  { %v400_v17 = vpop.f32.mrb[5].mxu0  ;;  %v399_v53 = vadd.f32 %v398_v29, %v257_v4 }
 0x1bb   :  { %v402_v20 = vpop.f32.mrb[6].mxu0  ;;  %v401_v36 = vadd.f32 %v400_v17, %v257_v4 }
 0x1bc   :  { %v403_v21 = vpop.f32.mrb[7].mxu0  ;;  %v409_v40 = vmax.f32 %v399_v53, 0.0 }
 0x1bd   :  { %v410_v50 = vmax.f32 %v401_v36, 0.0 }
 0x1be   :  { %v3075_v57 = vmul.f32 %v3066_v5, %v409_v40 }
 0x1bf   :  { %v357_v35 = vpop.f32.mrb[0].mxu1  ;;  %v3047_v49 = vmul.f32 %v3039_v52, %v410_v50 }
 0x1c0   :  { %v358_v37 = vadd.f32 %v357_v35, %v257_v4  ;;  %v359_v41 = vpop.f32.mrb[1].mxu1 }
 0x1c1   :  { %v361_v44 = vpop.f32.mrb[2].mxu1  ;;  %v360_v1 = vadd.f32 %v359_v41, %v257_v4 }
 0x1c2   :  { %v407_v46 = vmax.f32 %v358_v37, 0.0  ;;  %v362_v48 = vpop.f32.mrb[3].mxu1 }
 0x1c3   :  { %v408_v43 = vmax.f32 %v360_v1, 0.0 }
 0x1c4   :  { %v3042_v45 = vmul.f32 %v3034_v39, %v407_v46 }
 0x1c5   :  { %v3072_v62 = vmul.f32 %v3063_v38, %v408_v43 }
 0x1c6   :  { %v2158_v47 = vpack.i.bf16 %v3042_v45, %v3019_v14  ;;  %v2178_v0 = vpack.i.bf16 %v3042_v45, %v3047_v49 }
 0x1c7   :  { %v2193_v58 = vpack.i.bf16 %v3075_v57, %v3072_v62  ;;  %v2208_v22 = vpack.i.bf16 %v3072_v62, %v3042_v45 }
 0x1c8   :  { %2159 = vrot.lane.b32.xlu0 %v2158_v47, %s2626_s28  ;;  %2169 = vrot.lane.b32.xlu1 %v2158_v47, %s2627_s29 }
 0x1cc   :  { %2164 = vrot.lane.b32.xlu0 %v2158_v47, %s2628_s30  ;;  %2179 = vrot.lane.b32.xlu1 %v2178_v0, %s2623_s2 }
 0x1d0   :  { %2174 = vrot.lane.b32.xlu0 %v2178_v0, %s2622_s25  ;;  %505 = vrot.lane.b32.xlu1 %v3047_v49, %s2624_s26 }
 0x1d4   :  { %2184 = vrot.lane.b32.xlu0 %v2178_v0, %s2625_s27  ;;  %549 = vrot.lane.b32.xlu1 %v3016_v25, %s2627_s29 }
 0x1d8   :  { %2189 = vrot.lane.b32.xlu0 %v2138_v30, %s2630_s5  ;;  %571 = vrot.lane.b32.xlu1 %v3042_v45, %s2630_s5 }
 0x1dc   :  { %2194 = vrot.lane.b32.xlu0 %v2193_v58, %s2622_s25  ;;  %2199 = vrot.lane.b32.xlu1 %v2193_v58, %s2623_s2 }
 0x1e0   :  { %2204 = vrot.lane.b32.xlu0 %v2193_v58, %s2625_s27  ;;  %2209 = vrot.lane.b32.xlu1 %v2208_v22, %s2624_s26 }
 0x1e4   :  { %503 = vrot.lane.b32.xlu0 %v3075_v57, %s2624_s26  ;;  %2214 = vrot.lane.b32.xlu1 %v2193_v58, %s2626_s28 }
 0x1e8   :  { %523 = vrot.lane.b32.xlu0 %v3047_v49, %s2626_s28  ;;  %2219 = vrot.lane.b32.xlu1 %v2193_v58, %s2628_s30 }
 0x1ec   :  { %541 = vrot.lane.b32.xlu0 %v3047_v49, %s2628_s30  ;;  %2224 = vrot.lane.b32.xlu1 %v2193_v58, %s2627_s29 }
 0x1f0   :  { %559 = vrot.lane.b32.xlu0 %v3047_v49, %s2627_s29  ;;  %2229 = vrot.lane.b32.xlu1 %v2193_v58, %s2630_s5 }
 0x1f4   :  { %577 = vrot.lane.b32.xlu0 %v3047_v49, %s2630_s5  ;;  %618 = vperm.xlu1 %2233, %v2760_v12  }
 0x21e   :  { %v3103_v24 = vpop.permute.xlu1 %513  ;;  %v3115_v51 = vpop.permute.xlu0 %531 }
 0x222   :  { %v3105_v33 = vpop.permute.xlu1 %2139  ;;  %v3117_v19 = vpop.permute.xlu0 %2149 }
 0x223   :  { %v2142_v61 = vunpack.i.h.bf16 %v3105_v33  ;;  %v2141_v56 = vunpack.i.l.bf16 %v3105_v33  ;;  %v2152_v26 = vunpack.i.h.bf16 %v3117_v19  ;;  %v2151_v27 = vunpack.i.l.bf16 %v3117_v19 }
 0x225   :  { %v457_v2 = vsel %vm83_vm0, %v2141_v56, %v2142_v61  ;;  %v493_v20 = vsel %vm121_vm2, %v2151_v27, %v2152_v26 }
 0x226   :  { %v2145_v59 = vpop.permute.xlu1 %2144 }
 0x227   :  { %v2147_v23 = vunpack.i.h.bf16 %v2145_v59  ;;  %v2146_v63 = vunpack.i.l.bf16 %v2145_v59 }
 0x229   :  { %v475_v3 = vsel %vm102_vm1, %v2146_v63, %v2147_v23 }
 0x22a   :  { %v586_v12 = vpack.c.bf16 %v475_v3, %v457_v2  ;;  %v3119_v4 = vpop.permute.xlu1 %2154 }
 0x22b   :  { %v2157_v31 = vunpack.i.h.bf16 %v3119_v4  ;;  %v2156_v34 = vunpack.i.l.bf16 %v3119_v4 }
 0x22c   :  { %642 = vmatprep.subr.bf16.mxu1 %v586_v12 }
 0x22d   :  { %v511_v37 = vsel %vm140_vm3, %v2156_v34, %v2157_v31 }
 0x22e   :  { %v592_v47 = vpack.c.bf16 %v511_v37, %v493_v20 }
 0x23a   :  { %v3121_v15 = vpop.permute.xlu0 %2159  ;;  %v3123_v18 = vpop.permute.xlu1 %2169 }
 0x23b   :  { %v2162_v21 = vunpack.i.h.bf16 %v3121_v15  ;;  %v2161_v35 = vunpack.i.l.bf16 %v3121_v15  ;;  %v4469_v40 = vunpack.i.h.bf16 %v3123_v18  ;;  %v2171_v58 = vunpack.i.l.bf16 %v3123_v18 }
 0x23d   :  { %v528_v43 = vsel %vm159_vm4, %v2161_v35, %v2162_v21  ;;  %v564_v37 = vsel %vm197_vm5, %v2171_v58, %v4469_v40 }
 0x23e   :  { %v3127_v28 = vpop.permute.xlu0 %2164  ;;  %v3129_v13 = vpop.permute.xlu1 %2179  ;;  %v598_v12 = vpack.c.bf16 %v528_v43, %v3019_v14 }
 0x23f   :  { %v2181_v30 = vunpack.i.l.bf16 %v3129_v13  ;;  %v4470_v0 = vunpack.i.h.bf16 %v3127_v28  ;;  %v2166_v1 = vunpack.i.l.bf16 %v3127_v28  ;;  %v2182_v59 = vunpack.i.h.bf16 %v3129_v13 }
 0x241   :  { %v476_v41 = vsel %vm102_vm1, %v2181_v30, %v2146_v63  ;;  %v474_v14 = vsel %vm102_vm1, %v2147_v23, %v2182_v59 }
 0x242   :  { %v3134_v29 = vpop.permute.xlu0 %2174  ;;  %v3136_v17 = vpop.permute.xlu1 %505 }
 0x243   :  { %v2176_v36 = vunpack.i.l.bf16 %v3134_v29  ;;  %v512_v22 = vsel %vm140_vm3, %v3136_v17, %v2156_v34  ;;  %v2177_v34 = vunpack.i.h.bf16 %v3134_v29 }
 0x245   :  { %v458_v44 = vsel %vm83_vm0, %v2176_v36, %v2141_v56  ;;  %v529_v56 = vsel %vm159_vm4, %v3103_v24, %v2161_v35  ;;  %v546_v35 = vsel %vm178_vm6, %v2166_v1, %v4470_v0 }
 0x246   :  { %v3157_v46 = vpop.permute.xlu0 %2184  ;;  %v3159_v48 = vpop.permute.xlu1 %549  ;;  %v585_v50 = vpack.c.bf16 %v476_v41, %v458_v44 }
 0x247   :  { %v4473_v53 = vunpack.i.l.bf16 %v3157_v46  ;;  %v2187_v33 = vunpack.i.h.bf16 %v3157_v46 }
 0x248   :  { %643 = vmatpush1.bf16.msra.mxu1 %v585_v50  ;;  %v597_v50 = vpack.c.bf16 %v529_v56, %v3016_v25  ;;  %v547_v25 = vsel %vm178_vm6, %v3115_v51, %v2166_v1 }
 0x249   :  { %v494_v60 = vsel %vm121_vm2, %v4473_v53, %v2151_v27  ;;  %644 = vmatprep.subr.bf16.mxu1 %v592_v47  ;;  %v604_v47 = vpack.c.bf16 %v564_v37, %v546_v35 }
 0x24a   :  { %v3181_v63 = vpop.permute.xlu0 %2189  ;;  %v3183_v2 = vpop.permute.xlu1 %571  ;;  %v591_v3 = vpack.c.bf16 %v512_v22, %v494_v60  ;;  %v456_v22 = vsel %vm83_vm0, %v2142_v61, %v2177_v34  ;;  %v565_v60 = vsel %vm197_vm5, %v3159_v48, %v2171_v58 }
 0x24b   :  { %v2192_v20 = vunpack.i.h.bf16 %v3181_v63  ;;  %v4468_v27 = vunpack.i.l.bf16 %v3181_v63  ;;  %v587_v8 = vpack.c.bf16 %v474_v14, %v456_v22  ;;  %v492_v14 = vsel %vm121_vm2, %v2152_v26, %v2187_v33  ;;  %v3251_v22 = vld [vmem:[#allocation7 + $0x4] sm:$0xf] }
 0x24c   :  { %645 = vmatpush1.bf16.msra.mxu1 %v591_v3 }
 0x24d   :  { %646 = vmatprep.subr.bf16.mxu1 %v598_v12  ;;  %v583_v43 = vsel %vm216_vm7, %v4468_v27, %v2192_v20  ;;  %v582_v56 = vsel %vm216_vm7, %v2192_v20, %v3183_v2  ;;  %v603_v27 = vpack.c.bf16 %v565_v60, %v547_v25 }
 0x24e   :  { %v2195_v41 = vpop.permute.xlu0 %2194  ;;  %v2200_v44 = vpop.permute.xlu1 %2199  ;;  %v609_v37 = vpack.c.bf16 %v583_v43, %v583_v43  ;;  %v610_v53 = vpack.c.bf16 %v582_v56, %v582_v56 }
 0x24f   :  { %v2196_v23 = vunpack.i.l.bf16 %v2195_v41  ;;  %v2201_v3 = vunpack.i.l.bf16 %v2200_v44  ;;  %v2197_v12 = vunpack.i.h.bf16 %v2195_v41  ;;  %v2202_v35 = vunpack.i.h.bf16 %v2200_v44 }
 0x250   :  { %647 = vmatpush1.bf16.msra.mxu1 %v597_v50  ;;  %v625_v29 = vsel %vm263_vm8, %v609_v37, 0 }
 0x251   :  { %648 = vmatprep.subr.bf16.mxu1 %v604_v47  ;;  %v455_v61 = vsel %vm83_vm0, %v2177_v34, %v2196_v23  ;;  %v473_v58 = vsel %vm102_vm1, %v2182_v59, %v2201_v3  ;;  %v453_v34 = vsel %vm83_vm0, %v2197_v12, %v2176_v36  ;;  %v471_v59 = vsel %vm102_vm1, %v2202_v35, %v2181_v30 }
 0x252   :  { %v2205_v40 = vpop.permute.xlu0 %2204  ;;  %v2210_v1 = vpop.permute.xlu1 %2209  ;;  %v588_v0 = vpack.c.bf16 %v473_v58, %v455_v61  ;;  %v454_v30 = vsel %vm83_vm0, %v2196_v23, %v2197_v12  ;;  %v472_v19 = vsel %vm102_vm1, %v2201_v3, %v2202_v35  ;;  %v590_v50 = vpack.c.bf16 %v471_v59, %v453_v34 }
 0x253   :  { %v2206_v20 = vunpack.i.l.bf16 %v2205_v40  ;;  %v2212_v41 = vunpack.i.h.bf16 %v2210_v1  ;;  %v2211_v44 = vunpack.i.l.bf16 %v2210_v1  ;;  %v2207_v26 = vunpack.i.h.bf16 %v2205_v40 }
 0x254   :  { %649 = vmatpush1.bf16.msra.mxu1 %v603_v27  ;;  %683 = vmatprep.subr.bf16.mxu0 %v588_v0  ;;  %v589_v56 = vpack.c.bf16 %v472_v19, %v454_v30  ;;  %v4485_v58 = vmov 0   ;;  %v4486_v59 = vunpack.i.h.bf16 %v3127_v28 }
 0x255   :  { %v510_v0 = vsel %vm140_vm3, %v2157_v31, %v2211_v44  ;;  %1995 = vmatprep.subr.msk.bf16.mxu1 %vm263_vm8, %v610_v53  ;;  %684 = vmatpush1.bf16.msra.mxu0 %v587_v8  ;;  %v491_v13 = vsel %vm121_vm2, %v2187_v33, %v2206_v20  ;;  %v509_v31 = vsel %vm140_vm3, %v2211_v44, %v2212_v41 }
 0x256   :  { %v504_v36 = vpop.permute.xlu0 %503  ;;  %v2215_v4 = vpop.permute.xlu1 %2214  ;;  %v593_v8 = vpack.c.bf16 %v510_v0, %v492_v14  ;;  %v594_v43 = vpack.c.bf16 %v509_v31, %v491_v13  ;;  %v4487_v14 = vunpack.i.h.bf16 %v3123_v18 }
 0x257   :  { %v2217_v27 = vunpack.i.h.bf16 %v2215_v4  ;;  %v2216_v53 = vunpack.i.l.bf16 %v2215_v4  ;;  %v507_v47 = vsel %vm140_vm3, %v504_v36, %v3136_v17  ;;  %v4484_v17 = vunpack.i.l.bf16 %v3157_v46 }
 0x258   :  { %651 = vmatpush1.bf16.msra.mxu1 %v625_v29  ;;  %685 = vmatprep.subr.bf16.mxu0 %v594_v43  ;;  %v508_v15 = vsel %vm140_vm3, %v2212_v41, %v504_v36  ;;  %v490_v46 = vsel %vm121_vm2, %v2206_v20, %v2207_v26 }
 0x259   :  { %v527_v40 = vsel %vm159_vm4, %v2162_v21, %v2216_v53  ;;  %724 = vmatprep.subr.bf16.mxu1 %v590_v50  ;;  %v526_v60 = vsel %vm159_vm4, %v2216_v53, %v2217_v27  ;;  %v489_v12 = vsel %vm121_vm2, %v2207_v26, %v4484_v17  ;;  %686 = vmatpush1.bf16.msra.mxu0 %v593_v8 }
 0x25a   :  { %v524_v23 = vpop.permute.xlu0 %523  ;;  %v2220_v3 = vpop.permute.xlu1 %2219  ;;  %v600_v25 = vpack.c.bf16 %v526_v60, %v3072_v62  ;;  %v599_v21 = vpack.c.bf16 %v527_v40, %v3042_v45  ;;  %v596_v35 = vpack.c.bf16 %v507_v47, %v489_v12  ;;  %v595_v37 = vpack.c.bf16 %v508_v15, %v490_v46 }
 0x25b   :  { %1996 = vmatmul.mubr.msk.bf16.vlgmr.msra.gmra.mrb[4].mxu1 %vm259_vm9, %v3251_v22  ;;  %v530_v62 = vsel %vm159_vm4, %v524_v23, %v3103_v24  ;;  %v2222_v33 = vunpack.i.h.bf16 %v2220_v3  ;;  %v2221_v61 = vunpack.i.l.bf16 %v2220_v3  ;;  %v525_v45 = vsel %vm159_vm4, %v2217_v27, %v524_v23 }
 0x25c   :  { %687 = vmatprep.subr.bf16.mxu0 %v600_v25  ;;  %725 = vmatpush1.bf16.msra.mxu1 %v589_v56  ;;  %v602_v24 = vpack.c.bf16 %v530_v62, %v3047_v49  ;;  %v601_v49 = vpack.c.bf16 %v525_v45, %v3075_v57  ;;  %v4488_v60 = vunpack.i.l.bf16 %v3181_v63 }
 0x25d   :  { %726 = vmatprep.subr.bf16.mxu1 %v596_v35  ;;  %756 = vmatprep.mubr.bf16.mxu1 %v4485_v58  ;;  %v545_v20 = vsel %vm178_vm6, %v4486_v59, %v2221_v61  ;;  %v544_v29 = vsel %vm178_vm6, %v2221_v61, %v2222_v33 }
 0x25e   :  { %v542_v1 = vpop.permute.xlu0 %541  ;;  %v2225_v41 = vpop.permute.xlu1 %2224  ;;  %688 = vmatpush1.bf16.msra.mxu0 %v599_v21 }
 0x25f   :  { %v2227_v44 = vunpack.i.h.bf16 %v2225_v41  ;;  %v2226_v34 = vunpack.i.l.bf16 %v2225_v41  ;;  %v548_v28 = vsel %vm178_vm6, %v542_v1, %v3115_v51  ;;  %v543_v53 = vsel %vm178_vm6, %v2222_v33, %v542_v1 }
 0x260   :  { %727 = vmatpush1.bf16.msra.mxu1 %v595_v37 }
 0x261   :  { %v563_v0 = vsel %vm197_vm5, %v4487_v14, %v2226_v34  ;;  %728 = vmatprep.subr.bf16.mxu1 %v602_v24  ;;  %v562_v13 = vsel %vm197_vm5, %v2226_v34, %v2227_v44 }
 0x262   :  { %v560_v30 = vpop.permute.xlu0 %559  ;;  %v2230_v19 = vpop.permute.xlu1 %2229  ;;  %v606_v26 = vpack.c.bf16 %v562_v13, %v544_v29  ;;  %v605_v18 = vpack.c.bf16 %v563_v0, %v545_v20 }
 0x263   :  { %v561_v36 = vsel %vm197_vm5, %v2227_v44, %v560_v30  ;;  %v566_v4 = vsel %vm197_vm5, %v560_v30, %v3159_v48  ;;  %v2232_v31 = vunpack.i.h.bf16 %v2230_v19  ;;  %v2231_v27 = vunpack.i.l.bf16 %v2230_v19 }
 0x264   :  { %689 = vmatprep.subr.bf16.mxu0 %v606_v26  ;;  %729 = vmatpush1.bf16.msra.mxu1 %v601_v49  ;;  %v608_v57 = vpack.c.bf16 %v566_v4, %v548_v28  ;;  %v607_v50 = vpack.c.bf16 %v561_v36, %v543_v53 }
 0x265   :  { %690 = vmatpush1.bf16.msra.mxu0 %v605_v18  ;;  %v580_v51 = vsel %vm216_vm7, %v2231_v27, %v2232_v31  ;;  %v581_v8 = vsel %vm216_vm7, %v3183_v2, %v2231_v27  ;;  %v797_v27 = vsub.s32 1, %v3002_v54 }
 0x266   :  { %v578_v47 = vpop.permute.xlu0 %577  ;;  %730 = vmatprep.subr.bf16.mxu1 %v608_v57  ;;  %v612_v48 = vpack.c.bf16 %v580_v51, %v580_v51  ;;  %v611_v43 = vpack.c.bf16 %v581_v8, %v581_v8  ;;  %v845_v57 = vsub.s32 2, %v3002_v54 }
 0x267   :  { %v579_v40 = vsel %vm216_vm7, %v2232_v31, %v578_v47  ;;  %v584_v23 = vsel %vm216_vm7, %v578_v47, %v4488_v60  ;;  %v806_v8 = vrot.slane %v3031_v32, %v797_v27 }
 0x268   :  { %v613_v3 = vpack.c.bf16 %v579_v40, %v579_v40  ;;  %v614_v25 = vpack.c.bf16 %v584_v23, %v584_v23  ;;  %1997 = vmatprep.subr.msk.bf16.mxu0 %vm263_vm8, %v612_v48  ;;  %731 = vmatpush1.bf16.msra.mxu1 %v607_v50  ;;  %v631_v2 = vsel %vm263_vm8, %v611_v43, 0  ;;  %v854_v50 = vrot.slane %v3031_v32, %v845_v57 }
 0x269   :  { %692 = vmatpush1.bf16.msra.mxu0 %v631_v2  ;;  %v850_v23 = vrot.slane %v3007_v10, %v845_v57 }
 0x26a   :  { %1999 = vmatprep.subr.msk.bf16.mxu1 %vm263_vm8, %v614_v25  ;;  %v637_v56 = vsel %vm263_vm8, %v613_v3, 0  ;;  %v802_v25 = vrot.slane %v3007_v10, %v797_v27 }
 0x26c   :  { %1998 = vmatmul.mubr.msk.bf16.vlgmr.msra.gmra.mrb[8].mxu0 %vm259_vm9, %v3251_v22  ;;  %733 = vmatpush1.bf16.msra.mxu1 %v637_v56 }
 0x26d   :  { %1374 = vmatprep.mubr.bf16.mxu0 %v4485_v58 }
 0x26f   :  { %2000 = vmatmul.mubr.msk.bf16.vlgmr.msra.gmra.mrb[8].mxu1 %vm259_vm9, %v3251_v22 }
 0x270   :  { %1415 = vmatprep.mubr.bf16.mxu1 %v4485_v58 }
 0x273   :  { %v619_v21 = vpop.permute.xlu1 %618 }
 0x32e   :  { %v676_v63 = vpop.f32.mrb[4].mxu1 }
 0x32f   :  { %v678_v17 = vpop.f32.mrb[5].mxu1  ;;  %v677_v62 = vadd.f32 %v676_v63, %v619_v21 }
 0x330   :  { %v680_v12 = vpop.f32.mrb[6].mxu1  ;;  %v679_v34 = vadd.f32 %v678_v17, %v619_v21 }
 0x331   :  { %v681_v15 = vpop.f32.mrb[7].mxu1  ;;  %v765_v24 = vmax.f32 %v677_v62, 0.0  ;;  %v798_v12 = vrot.slane %v3005_v7, %v797_v27 }
 0x332   :  { %v766_v0 = vmax.f32 %v679_v34, 0.0 }
 0x333   :  { %v3330_v29 = vmul.f32 %v765_v24, %v3010_v11 }
 0x334   :  { %v3340_v28 = vmul.f32 %v766_v0, %v3013_v55 }
 0x33f   :  { %v717_v35 = vpop.f32.mrb[8].mxu0 }
 0x340   :  { %v718_v46 = vadd.f32 %v717_v35, %v619_v21  ;;  %v719_v33 = vpop.f32.mrb[9].mxu0 }
 0x341   :  { %v720_v61 = vadd.f32 %v719_v33, %v619_v21  ;;  %v721_v37 = vpop.f32.mrb[10].mxu0  ;;  %v818_v33 = vrot.slane %v3036_v42, %v797_v27 }
 0x342   :  { %v767_v1 = vmax.f32 %v718_v46, 0.0  ;;  %v722_v41 = vpop.f32.mrb[11].mxu0  ;;  %v758_v45 = vpop.f32.mrb[8].mxu1  ;;  %v866_v46 = vrot.slane %v3036_v42, %v845_v57 }
 0x343   :  { %v760_v44 = vpop.f32.mrb[9].mxu1  ;;  %v768_v59 = vmax.f32 %v720_v61, 0.0  ;;  %v759_v49 = vadd.f32 %v758_v45, %v619_v21 }
 0x344   :  { %v3323_v22 = vmul.f32 %v767_v1, %v3034_v39  ;;  %v762_v20 = vpop.f32.mrb[10].mxu1  ;;  %v761_v19 = vadd.f32 %v760_v44, %v619_v21  ;;  %v846_v21 = vrot.slane %v3005_v7, %v845_v57 }
 0x345   :  { %v763_v14 = vpop.f32.mrb[11].mxu1  ;;  %v3333_v13 = vmul.f32 %v768_v59, %v3063_v38  ;;  %v769_v30 = vmax.f32 %v759_v49, 0.0  ;;  %v858_v59 = vrot.slane %v3055_v9, %v845_v57 }
 0x346   :  { %829 = vrot.lane.b32.xlu1 %v3323_v22, %s2624_s26  ;;  %781 = vrot.lane.b32.xlu0 %v3323_v22, %s2626_s28  ;;  %v770_v18 = vmax.f32 %v761_v19, 0.0 }
 0x347   :  { %v3347_v26 = vmul.f32 %v769_v30, %v3066_v5  ;;  %v862_v30 = vrot.slane %v3060_v6, %v845_v57 }
 0x348   :  { %v3354_v36 = vmul.f32 %v770_v18, %v3039_v52  ;;  %v810_v18 = vrot.slane %v3055_v9, %v797_v27 }
 0x34a   :  { %783 = vrot.lane.b32.xlu1 %v3333_v13, %s2626_s28  ;;  %777 = vrot.lane.b32.xlu0 %v3330_v29, %s2626_s28 }
 0x34e   :  { %825 = vrot.lane.b32.xlu1 %v3330_v29, %s2624_s26  ;;  %827 = vrot.lane.b32.xlu0 %v3340_v28, %s2624_s26 }
 0x352   :  { %779 = vrot.lane.b32.xlu1 %v3340_v28, %s2626_s28  ;;  %833 = vrot.lane.b32.xlu0 %v3347_v26, %s2624_s26 }
 0x356   :  { %835 = vrot.lane.b32.xlu1 %v3354_v36, %s2624_s26  ;;  %787 = vrot.lane.b32.xlu0 %v3354_v36, %s2626_s28 }
 0x35a   :  { %831 = vrot.lane.b32.xlu1 %v3333_v13, %s2624_s26  ;;  %785 = vrot.lane.b32.xlu0 %v3347_v26, %s2626_s28 }
 0x3b8   :  { %v830_v4 = vpop.permute.xlu1 %829  ;;  %v782_v31 = vpop.permute.xlu0 %781 }
 0x3bc   :  { %v784_v53 = vpop.permute.xlu1 %783  ;;  %v778_v51 = vpop.permute.xlu0 %777 }
 0x3bd   :  { %v3370_v47 = vsel %vm159_vm4, %v782_v31, %v784_v53 }
 0x3be   :  { %v821_v60 = vmul.f32 %v806_v8, %v3370_v47 }
 0x3c0   :  { %v826_v48 = vpop.permute.xlu1 %825  ;;  %v828_v43 = vpop.permute.xlu0 %827 }
 0x3c1   :  { %v3374_v40 = vsel %vm140_vm3, %v828_v43, %v830_v4  ;;  %v3382_v2 = vsel %vm140_vm3, %v826_v48, %v828_v43 }
 0x3c2   :  { %v869_v3 = vmul.f32 %v854_v50, %v3374_v40  ;;  %v868_v35 = vmul.f32 %v850_v23, %v3382_v2 }
 0x3c4   :  { %v875_v56 = vadd.f32 %v869_v3, %v821_v60  ;;  %v780_v63 = vpop.permute.xlu1 %779  ;;  %v834_v17 = vpop.permute.xlu0 %833 }
 0x3c5   :  { %v3387_v15 = vsel %vm159_vm4, %v780_v63, %v782_v31  ;;  %v3396_v61 = vsel %vm159_vm4, %v778_v51, %v780_v63  ;;  %v814_v31 = vrot.slane %v3060_v6, %v797_v27 }
 0x3c6   :  { %v820_v62 = vmul.f32 %v802_v25, %v3387_v15  ;;  %v3399_v37 = vadd.f32 %v875_v56, %v3323_v22  ;;  %v819_v20 = vmul.f32 %v798_v12, %v3396_v61 }
 0x3c8   :  { %v874_v1 = vadd.f32 %v868_v35, %v820_v62  ;;  %v836_v41 = vpop.permute.xlu1 %835  ;;  %v788_v45 = vpop.permute.xlu0 %787  ;;  %889 = vrot.lane.b32.xlu0 %v3399_v37, %s2627_s29  ;;  %v2234_v35 = vpack.i.bf16 %v3333_v13, %v3323_v22  ;;  %v2244_v62 = vpack.i.bf16 %v3330_v29, %v3340_v28 }
 0x3c9   :  { %v3403_v44 = vsel %vm140_vm3, %v834_v17, %v836_v41  ;;  %v3407_v34 = vsel %vm140_vm3, %v836_v41, %v826_v48  ;;  %v3413_v24 = vsel %vm159_vm4, %v788_v45, %v778_v51 }
 0x3ca   :  { %v867_v14 = vmul.f32 %v846_v21, %v3407_v34  ;;  %v872_v0 = vmul.f32 %v866_v46, %v3403_v44  ;;  %v824_v49 = vmul.f32 %v818_v33, %v3413_v24  ;;  %v3422_v19 = vadd.f32 %v874_v1, %v3340_v28 }
 0x3cb   :  { %v2264_v46 = vpack.i.bf16 %v3347_v26, %v3333_v13  ;;  %v2279_v33 = vpack.i.bf16 %v3340_v28, %v3323_v22  ;;  %v2289_v1 = vpack.i.bf16 %v3330_v29, %v3347_v26 }
 0x3cc   :  { %v873_v51 = vadd.f32 %v867_v14, %v819_v20  ;;  %v832_v8 = vpop.permute.xlu1 %831  ;;  %v786_v50 = vpop.permute.xlu0 %785  ;;  %887 = vrot.lane.b32.xlu1 %v3422_v19, %s2627_s29  ;;  %935 = vrot.lane.b32.xlu0 %v3422_v19, %s2623_s2  ;;  %v878_v57 = vadd.f32 %v872_v0, %v824_v49 }
 0x3cd   :  { %v3428_v48 = vsel %vm140_vm3, %v832_v8, %v834_v17  ;;  %v3432_v43 = vsel %vm140_vm3, %v830_v4, %v832_v8  ;;  %v3440_v27 = vsel %vm159_vm4, %v786_v50, %v788_v45  ;;  %v3445_v23 = vsel %vm159_vm4, %v784_v53, %v786_v50 }
 0x3ce   :  { %v870_v60 = vmul.f32 %v858_v59, %v3432_v43  ;;  %v871_v4 = vmul.f32 %v862_v30, %v3428_v48  ;;  %v822_v3 = vmul.f32 %v810_v18, %v3445_v23  ;;  %v823_v25 = vmul.f32 %v814_v31, %v3440_v27 }
 0x3cf   :  { %v3451_v56 = vadd.f32 %v873_v51, %v3330_v29  ;;  %v3458_v53 = vadd.f32 %v878_v57, %v3354_v36  ;;  %v3503_v45 = vsub.s32 4, %v3002_v54  ;;  %v3506_v59 = vsub.s32 3, %v3002_v54 }
 0x3d0   :  { %v876_v63 = vadd.f32 %v870_v60, %v822_v3  ;;  %v877_v17 = vadd.f32 %v871_v4, %v823_v25 }
 0x3d1   :  { %933 = vrot.lane.b32.xlu1 %v3451_v56, %s2623_s2  ;;  %885 = vrot.lane.b32.xlu0 %v3451_v56, %s2627_s29  ;;  %v958_v0 = vrot.slane %v3007_v10, %v3503_v45  ;;  %v910_v49 = vrot.slane %v3007_v10, %v3506_v59  ;;  %v906_v54 = vrot.slane %v3005_v7, %v3506_v59 }
 0x3d2   :  { %v3465_v12 = vadd.f32 %v876_v63, %v3333_v13  ;;  %v3468_v21 = vadd.f32 %v877_v17, %v3347_v26  ;;  %v954_v50 = vrot.slane %v3005_v7, %v3503_v45 }
 0x3d5   :  { %895 = vrot.lane.b32.xlu0 %v3458_v53, %s2627_s29  ;;  %943 = vrot.lane.b32.xlu1 %v3458_v53, %s2623_s2 }
 0x3d9   :  { %891 = vrot.lane.b32.xlu0 %v3465_v12, %s2627_s29  ;;  %941 = vrot.lane.b32.xlu1 %v3468_v21, %s2623_s2 }
 0x3dd   :  { %893 = vrot.lane.b32.xlu0 %v3468_v21, %s2627_s29  ;;  %937 = vrot.lane.b32.xlu1 %v3399_v37, %s2623_s2 }
 0x3e1   :  { %2235 = vrot.lane.b32.xlu0 %v2234_v35, %s2622_s25  ;;  %939 = vrot.lane.b32.xlu1 %v3465_v12, %s2623_s2 }
 0x3e5   :  { %2245 = vrot.lane.b32.xlu0 %v2244_v62, %s2622_s25  ;;  %2240 = vrot.lane.b32.xlu1 %v2234_v35, %s2623_s2 }
 0x3e9   :  { %2255 = vrot.lane.b32.xlu0 %v2234_v35, %s2625_s27  ;;  %2250 = vrot.lane.b32.xlu1 %v2244_v62, %s2623_s2 }
 0x3ed   :  { %2265 = vrot.lane.b32.xlu0 %v2264_v46, %s2628_s30  ;;  %2260 = vrot.lane.b32.xlu1 %v2244_v62, %s2625_s27  ;;  %v974_v62 = vrot.slane %v3036_v42, %v3503_v45 }
 0x3f1   :  { %2280 = vrot.lane.b32.xlu0 %v2279_v33, %s2627_s29  ;;  %2270 = vrot.lane.b32.xlu1 %v2264_v46, %s2627_s29 }
 0x3f5   :  { %2290 = vrot.lane.b32.xlu0 %v2289_v1, %s2630_s5  ;;  %2275 = vrot.lane.b32.xlu1 %v2279_v33, %s2628_s30 }
 0x3f9   :  { %2285 = vrot.lane.b32.xlu1 %v2234_v35, %s2630_s5  ;;  %v926_v35 = vrot.slane %v3036_v42, %v3506_v59 }
 0x43a   :  { %v890_v41 = vpop.permute.xlu0 %889 }
 0x43e   :  { %v888_v20 = vpop.permute.xlu1 %887  ;;  %v936_v14 = vpop.permute.xlu0 %935 }
 0x43f   :  { %v900_v30 = vsel %vm197_vm5, %v888_v20, %v890_v41 }
 0x440   :  { %v928_v57 = vmul.f32 %v910_v49, %v900_v30 }
 0x443   :  { %v934_v18 = vpop.permute.xlu1 %933  ;;  %v886_v31 = vpop.permute.xlu0 %885 }
 0x444   :  { %v949_v51 = vsel %vm102_vm1, %v934_v18, %v936_v14  ;;  %v901_v60 = vsel %vm197_vm5, %v886_v31, %v888_v20 }
 0x445   :  { %v976_v8 = vmul.f32 %v958_v0, %v949_v51  ;;  %v927_v63 = vmul.f32 %v906_v54, %v901_v60  ;;  %v962_v51 = vrot.slane %v3031_v32, %v3503_v45  ;;  %v922_v60 = vrot.slane %v3060_v6, %v3506_v59 }
 0x447   :  { %v944_v10 = vpop.permute.xlu1 %943  ;;  %v896_v4 = vpop.permute.xlu0 %895  ;;  %v982_v3 = vadd.f32 %v976_v8, %v928_v57 }
 0x448   :  { %v950_v25 = vsel %vm102_vm1, %v944_v10, %v934_v18  ;;  %v902_v7 = vsel %vm197_vm5, %v896_v4, %v886_v31  ;;  %v914_v31 = vrot.slane %v3031_v32, %v3506_v59 }
 0x449   :  { %v975_v17 = vmul.f32 %v954_v50, %v950_v25  ;;  %v988_v20 = vadd.f32 %v982_v3, %v3422_v19  ;;  %v932_v30 = vmul.f32 %v926_v35, %v902_v7  ;;  %v970_v25 = vrot.slane %v3060_v6, %v3503_v45 }
 0x44b   :  { %v981_v46 = vadd.f32 %v975_v17, %v927_v63  ;;  %v942_v33 = vpop.permute.xlu1 %941  ;;  %v3530_v1 = vpop.permute.xlu0 %891  ;;  %v994_v19 = vmul.f32 0.25, %v988_v20 }
 0x44c   :  { %v945_v0 = vsel %vm102_vm1, %v942_v33, %v944_v10  ;;  %v899_v57 = vsel %vm197_vm5, %v890_v41, %v3530_v1 }
 0x44d   :  { %v987_v49 = vadd.f32 %v981_v46, %v3451_v56  ;;  %v980_v18 = vmul.f32 %v974_v62, %v945_v0  ;;  %v929_v17 = vmul.f32 %v914_v31, %v899_v57  ;;  %v3568_v7 = vmul.f32 %v994_v19, %v3013_v55 }
 0x44f   :  { %v993_v42 = vmul.f32 0.25, %v987_v49  ;;  %v986_v8 = vadd.f32 %v980_v18, %v932_v30  ;;  %v3540_v54 = vpop.permute.xlu1 %937  ;;  %v3542_v50 = vpop.permute.xlu0 %893 }
 0x450   :  { %v948_v56 = vsel %vm102_vm1, %v936_v14, %v3540_v54  ;;  %v897_v41 = vsel %vm197_vm5, %v3542_v50, %v896_v4 }
 0x451   :  { %v3553_v10 = vmul.f32 %v993_v42, %v3010_v11  ;;  %v992_v32 = vadd.f32 %v986_v8, %v3458_v53  ;;  %v977_v3 = vmul.f32 %v962_v51, %v948_v56  ;;  %v931_v46 = vmul.f32 %v922_v60, %v897_v41 }
 0x453   :  { %v998_v63 = vmul.f32 0.25, %v992_v32  ;;  %v3561_v35 = vpop.permute.xlu1 %939  ;;  %v3563_v14 = vpop.permute.xlu0 %2235  ;;  %v2299_v62 = vpack.i.bf16 %v3553_v10, %v3354_v36  ;;  %v983_v4 = vadd.f32 %v977_v3, %v929_v17 }
 0x454   :  { %v946_v6 = vsel %vm102_vm1, %v3561_v35, %v942_v33  ;;  %v4474_v0 = vunpack.i.h.bf16 %v3563_v14  ;;  %v2237_v49 = vunpack.i.l.bf16 %v3563_v14 }
 0x455   :  { %v3574_v53 = vmul.f32 %v998_v63, %v3039_v52  ;;  %v979_v20 = vmul.f32 %v970_v25, %v946_v6  ;;  %2300 = vrot.lane.b32.xlu1 %v2299_v62, %s2623_s2  ;;  %2295 = vrot.lane.b32.xlu0 %v2299_v62, %s2622_s25  ;;  %v989_v31 = vadd.f32 %v983_v4, %v3399_v37 }
 0x456   :  { %v1195_v56 = vsel %vm83_vm0, %v2237_v49, %v4474_v0  ;;  %v2319_v25 = vpack.i.bf16 %v3568_v7, %v3330_v29 }
 0x457   :  { %v985_v30 = vadd.f32 %v979_v20, %v931_v46  ;;  %v3580_v18 = vpop.permute.xlu1 %2240  ;;  %v3582_v51 = vpop.permute.xlu0 %2245  ;;  %v2309_v33 = vpack.i.bf16 %v3574_v53, %v3568_v7  ;;  %v995_v4 = vmul.f32 0.25, %v989_v31 }
 0x458   :  { %v4476_v42 = vunpack.i.h.bf16 %v3580_v18  ;;  %v2242_v8 = vunpack.i.l.bf16 %v3580_v18  ;;  %v2247_v19 = vunpack.i.l.bf16 %v3582_v51  ;;  %v2248_v57 = vunpack.i.h.bf16 %v3582_v51 }
 0x459   :  { %2310 = vrot.lane.b32.xlu1 %v2309_v33, %s2622_s25  ;;  %2305 = vrot.lane.b32.xlu0 %v2299_v62, %s2625_s27  ;;  %v991_v37 = vadd.f32 %v985_v30, %v3468_v21 }
 0x45a   :  { %v1213_v60 = vsel %vm102_vm1, %v2242_v8, %v4476_v42  ;;  %v1196_v21 = vsel %vm83_vm0, %v2247_v19, %v2237_v49  ;;  %v1197_v20 = vsel %vm83_vm0, %v2248_v57, %v2247_v19  ;;  %v1304_v42 = vpack.c.bf16 %v3445_v23, %v3333_v13 }
 0x45b   :  { %v3602_v32 = vpop.permute.xlu1 %2250  ;;  %v3604_v3 = vpop.permute.xlu0 %2255  ;;  %v1292_v41 = vpack.c.bf16 %v1213_v60, %v1195_v56  ;;  %v997_v31 = vmul.f32 0.25, %v991_v37 }
 0x45c   :  { %v2253_v63 = vunpack.i.h.bf16 %v3602_v32  ;;  %v2252_v17 = vunpack.i.l.bf16 %v3602_v32  ;;  %v4475_v62 = vunpack.i.h.bf16 %v3604_v3  ;;  %v2257_v6 = vunpack.i.l.bf16 %v3604_v3 }
 0x45d   :  { %2320 = vrot.lane.b32.xlu1 %v2319_v25, %s2628_s30  ;;  %1383 = vmatprep.subr.bf16.mxu1 %v1292_v41 }
 0x45e   :  { %v1214_v46 = vsel %vm102_vm1, %v2252_v17, %v2242_v8  ;;  %2315 = vrot.lane.b32.xlu0 %v2309_v33, %s2623_s2  ;;  %v1215_v30 = vsel %vm102_vm1, %v2253_v63, %v2252_v17  ;;  %v1231_v49 = vsel %vm121_vm2, %v2257_v6, %v4475_v62  ;;  %v2334_v17 = vpack.i.bf16 %v3568_v7, %v3553_v10 }
 0x45f   :  { %v1291_v56 = vpack.c.bf16 %v1214_v46, %v1196_v21  ;;  %v3630_v8 = vpop.permute.xlu1 %2260  ;;  %v3632_v60 = vpop.permute.xlu0 %2265  ;;  %v1290_v41 = vpack.c.bf16 %v1215_v30, %v1197_v20  ;;  %v1298_v0 = vpack.c.bf16 %v3432_v43, %v1231_v49  ;;  %v2339_v43 = vpack.i.bf16 %v3553_v10, %v3340_v28 }
 0x460   :  { %v2262_v19 = vunpack.i.l.bf16 %v3630_v8  ;;  %v4478_v37 = vunpack.i.h.bf16 %v3632_v60  ;;  %v2267_v21 = vunpack.i.l.bf16 %v3632_v60  ;;  %v3647_v46 = vmul.f32 %v995_v4, %v3034_v39 }
 0x461   :  { %2330 = vrot.lane.b32.xlu1 %v2309_v33, %s2625_s27  ;;  %1342 = vmatprep.subr.bf16.mxu0 %v1290_v41  ;;  %v3650_v33 = vmul.f32 %v997_v31, %v3066_v5  ;;  %v2263_v20 = vunpack.i.h.bf16 %v3630_v8  ;;  %v1303_v31 = vpack.c.bf16 %v3370_v47, %v3323_v22 }
 0x462   :  { %v1232_v62 = vsel %vm121_vm2, %v2262_v19, %v2257_v6  ;;  %2325 = vrot.lane.b32.xlu0 %v2319_v25, %s2627_s29  ;;  %1384 = vmatpush1.bf16.msra.mxu1 %v1291_v56  ;;  %v2349_v47 = vpack.i.bf16 %v3647_v46, %v3568_v7 }
 0x463   :  { %v1297_v6 = vpack.c.bf16 %v3374_v40, %v1232_v62  ;;  %1385 = vmatprep.subr.bf16.mxu1 %v1298_v0  ;;  %v3654_v30 = vpop.permute.xlu1 %2270  ;;  %v3656_v49 = vpop.permute.xlu0 %2280  ;;  %v966_v40 = vrot.slane %v3055_v9, %v3503_v45  ;;  %v1248_v0 = vsel %vm178_vm6, %v2267_v21, %v4478_v37  ;;  %v3686_v45 = vsel %vm121_vm2, %v2263_v20, %v2262_v19 }
 0x464   :  { %v4477_v25 = vunpack.i.h.bf16 %v3654_v30  ;;  %v2272_v56 = vunpack.i.l.bf16 %v3654_v30  ;;  %v2283_v41 = vunpack.i.h.bf16 %v3656_v49  ;;  %v2282_v4 = vunpack.i.l.bf16 %v3656_v49 }
 0x465   :  { %2340 = vrot.lane.b32.xlu1 %v2339_v43, %s2630_s5  ;;  %v918_v19 = vrot.slane %v3055_v9, %v3506_v59  ;;  %v1296_v32 = vpack.c.bf16 %v3382_v2, %v3686_v45  ;;  %v1302_v45 = vpack.c.bf16 %v3387_v15, %v3340_v28 }
 0x466   :  { %2335 = vrot.lane.b32.xlu0 %v2334_v17, %s2624_s26  ;;  %1386 = vmatpush1.bf16.msra.mxu1 %v1297_v6  ;;  %v1266_v22 = vsel %vm197_vm5, %v2272_v56, %v4477_v25  ;;  %v3692_v62 = vsel %vm197_vm5, %v2283_v41, %v2282_v4  ;;  %v2344_v6 = vpack.i.bf16 %v3650_v33, %v3574_v53 }
 0x467   :  { %1387 = vmatprep.subr.bf16.mxu1 %v1304_v42  ;;  %v3678_v13 = vpop.permute.xlu1 %2275  ;;  %v1310_v23 = vpack.c.bf16 %v1266_v22, %v1248_v0  ;;  %v947_v42 = vsel %vm102_vm1, %v3540_v54, %v3561_v35  ;;  %v898_v0 = vsel %vm197_vm5, %v3530_v1, %v3542_v50  ;;  %v3708_v22 = vpop.permute.xlu0 %2290  ;;  %v1267_v54 = vsel %vm197_vm5, %v2282_v4, %v2272_v56 }
 0x468   :  { %v2278_v17 = vunpack.i.h.bf16 %v3678_v13  ;;  %v2277_v43 = vunpack.i.l.bf16 %v3678_v13  ;;  %v978_v59 = vmul.f32 %v966_v40, %v947_v42  ;;  %v2359_v56 = vpack.i.bf16 %v3650_v33, %v3347_v26 }
 0x469   :  { %2350 = vrot.lane.b32.xlu1 %v2349_v47, %s2626_s28  ;;  %v2292_v4 = vunpack.i.l.bf16 %v3708_v22  ;;  %v930_v37 = vmul.f32 %v918_v19, %v898_v0  ;;  %v2364_v19 = vpack.i.bf16 %v3553_v10, %v3647_v46  ;;  %v2293_v13 = vunpack.i.h.bf16 %v3708_v22 }
 0x46a   :  { %v1249_v35 = vsel %vm178_vm6, %v2277_v43, %v2267_v21  ;;  %2345 = vrot.lane.b32.xlu0 %v2344_v6, %s2624_s26  ;;  %1388 = vmatpush1.bf16.msra.mxu1 %v1303_v31  ;;  %v3720_v9 = vsel %vm178_vm6, %v2278_v17, %v2277_v43 }
 0x46b   :  { %v1309_v1 = vpack.c.bf16 %v1267_v54, %v1249_v35  ;;  %1389 = vmatprep.subr.bf16.mxu1 %v1310_v23  ;;  %v3722_v50 = vpop.permute.xlu1 %2285  ;;  %v1308_v21 = vpack.c.bf16 %v3692_v62, %v3720_v9  ;;  %v984_v42 = vadd.f32 %v978_v59, %v930_v37  ;;  %v3748_v35 = vld [vmem:[#allocation7 + $0xc] sm:$0xf] }
 0x46c   :  { %v2288_v31 = vunpack.i.h.bf16 %v3722_v50  ;;  %v2287_v25 = vunpack.i.l.bf16 %v3722_v50 }
 0x46d   :  { %2360 = vrot.lane.b32.xlu1 %v2359_v56, %s2623_s2 }
 0x46e   :  { %v1284_v40 = vsel %vm216_vm7, %v2288_v31, %v2292_v4  ;;  %2355 = vrot.lane.b32.xlu0 %v2359_v56, %s2622_s25  ;;  %1390 = vmatpush1.bf16.msra.mxu1 %v1309_v1  ;;  %v1285_v23 = vsel %vm216_vm7, %v2287_v25, %v2288_v31  ;;  %v990_v1 = vadd.f32 %v984_v42, %v3465_v12 }
 0x46f   :  { %v1316_v43 = vpack.c.bf16 %v1284_v40, %v1284_v40  ;;  %v1315_v0 = vpack.c.bf16 %v1285_v23, %v1285_v23 }
 0x470   :  { %v996_v37 = vmul.f32 0.25, %v990_v1 }
 0x471   :  { %2365 = vrot.lane.b32.xlu1 %v2364_v19, %s2628_s30  ;;  %2003 = vmatprep.subr.msk.bf16.mxu1 %vm263_vm8, %v1316_v43  ;;  %v1331_v54 = vsel %vm263_vm8, %v1315_v0, 0 }
 0x472   :  { %1077 = vrot.lane.b32.xlu0 %v3553_v10, %s2626_s28  ;;  %1392 = vmatpush1.bf16.msra.mxu1 %v1331_v54  ;;  %v3761_v59 = vmul.f32 %v996_v37, %v3063_v38 }
 0x474   :  { %v2384_v12 = vpack.i.bf16 %v3647_v46, %v3761_v59 }
 0x475   :  { %2375 = vrot.lane.b32.xlu1 %v2359_v56, %s2625_s27  ;;  %2004 = vmatmul.mubr.msk.bf16.vlgmr.msra.gmra.mrb[12].mxu1 %vm259_vm9, %v3748_v35  ;;  %v2632_v56 = vmov 2  }
 0x476   :  { %2370 = vrot.lane.b32.xlu0 %v2364_v19, %s2627_s29  ;;  %1518 = vmatprep.mubr.bf16.mxu1 %v4485_v58 }
 0x477   :  { %2424 = vset.pattern.permute.xlu0 %v2632_v56 }
 0x479   :  { %1245 = vrot.lane.b32.xlu1 %v3354_v36, %s2628_s30 }
 0x47a   :  { %1263 = vrot.lane.b32.xlu0 %v3354_v36, %s2627_s29 }
 0x47d   :  { %1281 = vrot.lane.b32.xlu1 %v3354_v36, %s2630_s5 }
 0x47e   :  { %2380 = vrot.lane.b32.xlu0 %v2349_v47, %s2630_s5  ;;  %v2419_v47 = vpack.i.bf16 %v3574_v53, %v3650_v33 }
 0x481   :  { %2385 = vrot.lane.b32.xlu1 %v2384_v12, %s2622_s25 }
 0x482   :  { %2390 = vrot.lane.b32.xlu0 %v2384_v12, %s2623_s2 }
 0x485   :  { %2400 = vrot.lane.b32.xlu1 %v2384_v12, %s2624_s26 }
 0x486   :  { %2395 = vrot.lane.b32.xlu0 %v2384_v12, %s2625_s27 }
 0x489   :  { %2410 = vrot.lane.b32.xlu1 %v2344_v6, %s2628_s30 }
 0x48a   :  { %2405 = vrot.lane.b32.xlu0 %v2344_v6, %s2626_s28 }
 0x48d   :  { %1083 = vrot.lane.b32.xlu1 %v3761_v59, %s2626_s28 }
 0x48e   :  { %2415 = vrot.lane.b32.xlu0 %v2344_v6, %s2627_s29  ;;  %v3789_v6 = vld [vmem:[%s4466_s3] sm:$0xff]  ;;  %s2634_s3 = smov [#allocation8]  }
 0x48f   :  { %s1979_s10 = sshll.u32 %s2634_s3, 4  ;;  %s1980_s10 = int_to_ptr.vmem [resolvable:$true] %s1979_s10 }
 0x490   :  { %s2589_s1 = scalar_lea.vmem %s1980_s10, 768  ;;  %p2594_p11 = scmp.lt.s32.totalorder %s1980_s10, %s1980_s10 }
 0x491   :  { %1101 = vrot.lane.b32.xlu1 %v3761_v59, %s2628_s30  ;;  %p2590_p10 = scmp.ne.s32.totalorder %s1980_s10, %s2589_s1  ;;  %p2595_p12 = scmp.lt.s32.totalorder %s2589_s1, %s2589_s1 }
 0x492   :  { %2420 = vrot.lane.b32.xlu0 %v2419_v47, %s2630_s5 }
 0x493   :  { %p2596_p13 = por %p2595_p12, %p2594_p11 }
 0x495   :  { %1137 = vrot.lane.b32.xlu1 %v3761_v59, %s2630_s5  ;;  %p2597_p0 = pnand %p2596_p13, %p2590_p10 }
 0x496   :  { %1119 = vrot.lane.b32.xlu0 %v3761_v59, %s2627_s29 }
 0x49a   :  { %1610 = vperm.xlu0 %2424, %v3789_v6  }
 0x4c7   :  { %v3792_v31 = vpop.permute.xlu1 %2300  ;;  %v3795_v23 = vpop.permute.xlu0 %2295 }
 0x4c8   :  { %v2302_v40 = vunpack.i.l.bf16 %v3792_v31  ;;  %v2297_v42 = vunpack.i.l.bf16 %v3795_v23  ;;  %v2298_v47 = vunpack.i.h.bf16 %v3795_v23 }
 0x4ca   :  { %v1216_v43 = vsel %vm102_vm1, %v2302_v40, %v2253_v63  ;;  %v1198_v19 = vsel %vm83_vm0, %v2297_v42, %v2248_v57 }
 0x4cb   :  { %v3810_v0 = vpop.permute.xlu1 %2310  ;;  %v1289_v54 = vpack.c.bf16 %v1216_v43, %v1198_v19  ;;  %v3812_v1 = vpop.permute.xlu0 %2305  ;;  %v2303_v43 = vunpack.i.h.bf16 %v3792_v31 }
 0x4cc   :  { %v2307_v37 = vunpack.i.l.bf16 %v3812_v1  ;;  %v4479_v12 = vunpack.i.h.bf16 %v3810_v0  ;;  %v2312_v51 = vunpack.i.l.bf16 %v3810_v0  ;;  %v2308_v49 = vunpack.i.h.bf16 %v3812_v1 }
 0x4cd   :  { %1343 = vmatpush1.bf16.msra.mxu0 %v1289_v54 }
 0x4ce   :  { %v1234_v57 = vsel %vm121_vm2, %v2307_v37, %v2263_v20  ;;  %1344 = vmatprep.subr.bf16.mxu0 %v1296_v32  ;;  %v1022_v20 = vsel %vm83_vm0, %v4479_v12, %v2298_v47  ;;  %v1021_v15 = vsel %vm83_vm0, %v2298_v47, %v2312_v51 }
 0x4cf   :  { %v3825_v63 = vpop.permute.xlu1 %2320  ;;  %v1295_v56 = vpack.c.bf16 %v3407_v34, %v1234_v57  ;;  %v1301_v57 = vpack.c.bf16 %v3396_v61, %v3330_v29 }
 0x4d0   :  { %v3829_v2 = vpop.permute.xlu0 %2315  ;;  %v2322_v54 = vunpack.i.l.bf16 %v3825_v63 }
 0x4d1   :  { %v4480_v8 = vunpack.i.h.bf16 %v3829_v2  ;;  %v2317_v19 = vunpack.i.l.bf16 %v3829_v2  ;;  %1345 = vmatpush1.bf16.msra.mxu0 %v1295_v56 }
 0x4d2   :  { %1346 = vmatprep.subr.bf16.mxu0 %v1302_v45  ;;  %v1251_v47 = vsel %vm178_vm6, %v2322_v54, %v2278_v17 }
 0x4d3   :  { %v1040_v34 = vsel %vm102_vm1, %v4480_v8, %v2303_v43  ;;  %v3845_v28 = vpop.permute.xlu1 %2330  ;;  %v1039_v32 = vsel %vm102_vm1, %v2303_v43, %v2317_v19 }
 0x4d4   :  { %v1149_v56 = vpack.c.bf16 %v1040_v34, %v1022_v20  ;;  %v3857_v12 = vpop.permute.xlu0 %2325  ;;  %v1150_v8 = vpack.c.bf16 %v1039_v32, %v1021_v15  ;;  %v4481_v43 = vunpack.i.l.bf16 %v3845_v28  ;;  %v2333_v15 = vunpack.i.h.bf16 %v3845_v28 }
 0x4d5   :  { %v2327_v45 = vunpack.i.l.bf16 %v3857_v12  ;;  %1347 = vmatpush1.bf16.msra.mxu0 %v1301_v57 }
 0x4d6   :  { %1486 = vmatprep.subr.bf16.mxu1 %v1150_v8  ;;  %1348 = vmatprep.subr.bf16.mxu0 %v1308_v21  ;;  %v1057_v57 = vsel %vm121_vm2, %v2308_v49, %v4481_v43  ;;  %v1058_v43 = vsel %vm121_vm2, %v2333_v15, %v2308_v49  ;;  %v4489_v49 = vunpack.i.h.bf16 %v3580_v18 }
 0x4d7   :  { %v1269_v29 = vsel %vm197_vm5, %v2327_v45, %v2283_v41  ;;  %1487 = vmatpush1.bf16.msra.mxu1 %v1149_v56  ;;  %v3876_v61 = vpop.permute.xlu1 %2340 }
 0x4d8   :  { %v1307_v8 = vpack.c.bf16 %v1269_v29, %v1251_v47  ;;  %v2342_v17 = vunpack.i.l.bf16 %v3876_v61  ;;  %v3880_v20 = vpop.permute.xlu0 %2335 }
 0x4d9   :  { %v4483_v34 = vunpack.i.h.bf16 %v3880_v20  ;;  %v2337_v41 = vunpack.i.l.bf16 %v3880_v20 }
 0x4da   :  { %v1286_v62 = vsel %vm216_vm7, %v2342_v17, %v2287_v25  ;;  %1349 = vmatpush1.bf16.msra.mxu0 %v1307_v8  ;;  %v1287_v9 = vsel %vm216_vm7, %v2293_v13, %v2342_v17 }
 0x4db   :  { %v1314_v21 = vpack.c.bf16 %v1286_v62, %v1286_v62  ;;  %v3894_v32 = vpop.permute.xlu1 %2350  ;;  %v1075_v50 = vsel %vm140_vm3, %v2337_v41, %v4483_v34  ;;  %v1313_v25 = vpack.c.bf16 %v1287_v9, %v1287_v9 }
 0x4dc   :  { %v4482_v56 = vunpack.i.h.bf16 %v3894_v32  ;;  %v2352_v47 = vunpack.i.l.bf16 %v3894_v32  ;;  %v3906_v29 = vpop.permute.xlu0 %2345  ;;  %v1156_v8 = vpack.c.bf16 %v1075_v50, %v1057_v57 }
 0x4dd   :  { %v2347_v17 = vunpack.i.l.bf16 %v3906_v29  ;;  %2001 = vmatprep.subr.msk.bf16.mxu0 %vm263_vm8, %v1314_v21  ;;  %v1325_v62 = vsel %vm263_vm8, %v1313_v25, 0 }
 0x4de   :  { %1488 = vmatprep.subr.bf16.mxu1 %v1156_v8  ;;  %1351 = vmatpush1.bf16.msra.mxu0 %v1325_v62  ;;  %v1092_v9 = vsel %vm159_vm4, %v2352_v47, %v4482_v56 }
 0x4df   :  { %v1076_v57 = vsel %vm140_vm3, %v2347_v17, %v2337_v41  ;;  %v3923_v21 = vpop.permute.xlu1 %2360  ;;  %v1162_v50 = vpack.c.bf16 %v1092_v9, %v3568_v7 }
 0x4e0   :  { %v1155_v25 = vpack.c.bf16 %v1076_v57, %v1058_v43  ;;  %v2362_v8 = vunpack.i.l.bf16 %v3923_v21  ;;  %v3927_v62 = vpop.permute.xlu0 %2355  ;;  %v4490_v43 = vunpack.i.h.bf16 %v3563_v14 }
 0x4e1   :  { %v2357_v56 = vunpack.i.l.bf16 %v3927_v62  ;;  %2002 = vmatmul.mubr.msk.bf16.vlgmr.msra.gmra.mrb[12].mxu0 %vm259_vm9, %v3748_v35 }
 0x4e2   :  { %v1212_v34 = vsel %vm102_vm1, %v4489_v49, %v2362_v8  ;;  %1489 = vmatpush1.bf16.msra.mxu1 %v1155_v25  ;;  %v1211_v7 = vsel %vm102_vm1, %v2362_v8, %v2302_v40  ;;  %1456 = vmatprep.mubr.bf16.mxu0 %v4485_v58  ;;  %v2328_v49 = vunpack.i.h.bf16 %v3857_v12  ;;  %v4493_v12 = vunpack.i.h.bf16 %v3654_v30 }
 0x4e3   :  { %v1194_v41 = vsel %vm83_vm0, %v4490_v43, %v2357_v56  ;;  %1490 = vmatprep.subr.bf16.mxu1 %v1162_v50  ;;  %v3945_v9 = vpop.permute.xlu1 %2365  ;;  %v1193_v18 = vsel %vm83_vm0, %v2357_v56, %v2297_v42  ;;  %v2323_v42 = vunpack.i.h.bf16 %v3825_v63  ;;  %v4491_v43 = vunpack.i.h.bf16 %v3604_v3 }
 0x4e4   :  { %v1293_v57 = vpack.c.bf16 %v1212_v34, %v1194_v41  ;;  %v3951_v31 = vpop.permute.xlu0 %1077  ;;  %v1294_v25 = vpack.c.bf16 %v1211_v7, %v1193_v18  ;;  %v2368_v14 = vunpack.i.h.bf16 %v3945_v9  ;;  %v2367_v8 = vunpack.i.l.bf16 %v3945_v9 }
 0x4e5   :  { %v1093_v40 = vsel %vm159_vm4, %v3951_v31, %v2352_v47  ;;  %v4492_v63 = vunpack.i.h.bf16 %v3632_v60 }
 0x4e6   :  { %v1161_v50 = vpack.c.bf16 %v1093_v40, %v3553_v10  ;;  %1424 = vmatprep.subr.bf16.mxu0 %v1294_v25  ;;  %v1111_v10 = vsel %vm178_vm6, %v2368_v14, %v2323_v42 }
 0x4e7   :  { %1425 = vmatpush1.bf16.msra.mxu0 %v1293_v57  ;;  %v3959_v23 = vpop.permute.xlu1 %2375  ;;  %v1110_v57 = vsel %vm178_vm6, %v2323_v42, %v2367_v8  ;;  %v1306_v42 = vpack.c.bf16 %v3413_v24, %v3354_v36  ;;  %v1305_v36 = vpack.c.bf16 %v3440_v27, %v3347_v26 }
 0x4e8   :  { %v2377_v34 = vunpack.i.l.bf16 %v3959_v23  ;;  %v3963_v56 = vpop.permute.xlu0 %2370  ;;  %1491 = vmatpush1.bf16.msra.mxu1 %v1161_v50 }
 0x4e9   :  { %v2373_v47 = vunpack.i.h.bf16 %v3963_v56  ;;  %v2372_v7 = vunpack.i.l.bf16 %v3963_v56 }
 0x4ea   :  { %v1230_v41 = vsel %vm121_vm2, %v4491_v43, %v2377_v34  ;;  %v1229_v18 = vsel %vm121_vm2, %v2377_v34, %v2307_v37 }
 0x4eb   :  { %v1299_v25 = vpack.c.bf16 %v3428_v48, %v1230_v41  ;;  %v1129_v3 = vsel %vm197_vm5, %v2373_v47, %v2328_v49  ;;  %v1246_v40 = vpop.permute.xlu1 %1245  ;;  %v1300_v50 = vpack.c.bf16 %v3403_v44, %v1229_v18  ;;  %v1128_v1 = vsel %vm197_vm5, %v2328_v49, %v2372_v7 }
 0x4ec   :  { %v1167_v37 = vpack.c.bf16 %v1129_v3, %v1111_v10  ;;  %v1264_v34 = vpop.permute.xlu0 %1263  ;;  %v1168_v43 = vpack.c.bf16 %v1128_v1, %v1110_v57  ;;  %v2363_v48 = vunpack.i.h.bf16 %v3923_v21  ;;  %v2358_v41 = vunpack.i.h.bf16 %v3927_v62 }
 0x4ed   :  { %1426 = vmatprep.subr.bf16.mxu0 %v1300_v50  ;;  %v1252_v44 = vsel %vm178_vm6, %v1246_v40, %v2322_v54  ;;  %v1270_v49 = vsel %vm197_vm5, %v1264_v34, %v2327_v45  ;;  %v2343_v21 = vunpack.i.h.bf16 %v3876_v61  ;;  %v1247_v54 = vsel %vm178_vm6, %v4492_v63, %v1246_v40 }
 0x4ee   :  { %1492 = vmatprep.subr.bf16.mxu1 %v1168_v43  ;;  %1427 = vmatpush1.bf16.msra.mxu0 %v1299_v25  ;;  %v1265_v45 = vsel %vm197_vm5, %v4493_v12, %v1264_v34  ;;  %v2348_v62 = vunpack.i.h.bf16 %v3906_v29  ;;  %v1312_v10 = vpack.c.bf16 %v1270_v49, %v1252_v44  ;;  %v2378_v57 = vunpack.i.h.bf16 %v3959_v23 }
 0x4ef   :  { %1493 = vmatpush1.bf16.msra.mxu1 %v1167_v37  ;;  %v1282_v24 = vpop.permute.xlu1 %1281  ;;  %1428 = vmatprep.subr.bf16.mxu0 %v1306_v42  ;;  %v4494_v25 = vunpack.i.h.bf16 %v3810_v0  ;;  %v4495_v3 = vunpack.i.h.bf16 %v3829_v2  ;;  %v1311_v50 = vpack.c.bf16 %v1265_v45, %v1247_v54 }
 0x4f0   :  { %v1283_v26 = vsel %vm216_vm7, %v2292_v4, %v1282_v24  ;;  %v4021_v27 = vpop.permute.xlu0 %2380  ;;  %v1288_v30 = vsel %vm216_vm7, %v1282_v24, %v2293_v13  ;;  %v1071_v63 = vsel %vm140_vm3, %v2348_v62, %v2347_v17  ;;  %v4060_v17 = vld [vmem:[#allocation7 + $0x8] sm:$0xf] }
 0x4f1   :  { %v2383_v60 = vunpack.i.h.bf16 %v4021_v27  ;;  %v2382_v18 = vunpack.i.l.bf16 %v4021_v27  ;;  %v1017_v4 = vsel %vm83_vm0, %v2358_v41, %v4494_v25  ;;  %v1035_v40 = vsel %vm102_vm1, %v2363_v48, %v4495_v3 }
 0x4f2   :  { %1429 = vmatpush1.bf16.msra.mxu0 %v1305_v36  ;;  %v1317_v1 = vpack.c.bf16 %v1283_v26, %v1283_v26  ;;  %v1318_v49 = vpack.c.bf16 %v1288_v30, %v1288_v30  ;;  %v1154_v45 = vpack.c.bf16 %v1035_v40, %v1017_v4  ;;  %v1053_v30 = vsel %vm121_vm2, %v2378_v57, %v2333_v15 }
 0x4f3   :  { %v1146_v22 = vsel %vm216_vm7, %v2382_v18, %v2383_v60  ;;  %v2386_v23 = vpop.permute.xlu1 %2385  ;;  %1430 = vmatprep.subr.bf16.mxu0 %v1312_v10  ;;  %v1147_v13 = vsel %vm216_vm7, %v2343_v21, %v2382_v18  ;;  %v1160_v0 = vpack.c.bf16 %v1071_v63, %v1053_v30 }
 0x4f4   :  { %v1174_v37 = vpack.c.bf16 %v1146_v22, %v1146_v22  ;;  %v2388_v34 = vunpack.i.h.bf16 %v2386_v23  ;;  %v2387_v43 = vunpack.i.l.bf16 %v2386_v23  ;;  %v2391_v42 = vpop.permute.xlu0 %2390  ;;  %v1173_v44 = vpack.c.bf16 %v1147_v13, %v1147_v13 }
 0x4f5   :  { %v2393_v36 = vunpack.i.h.bf16 %v2391_v42  ;;  %v2392_v24 = vunpack.i.l.bf16 %v2391_v42 }
 0x4f6   :  { %v1018_v54 = vsel %vm83_vm0, %v2387_v43, %v2358_v41  ;;  %2007 = vmatprep.subr.msk.bf16.mxu1 %vm263_vm8, %v1174_v37  ;;  %1431 = vmatpush1.bf16.msra.mxu0 %v1311_v50  ;;  %v1469_v12 = vsel %vm263_vm8, %v1173_v44, 0  ;;  %v1019_v26 = vsel %vm83_vm0, %v2388_v34, %v2387_v43  ;;  %v1337_v41 = vsel %vm263_vm8, %v1317_v1, 0 }
 0x4f7   :  { %v1036_v10 = vsel %vm102_vm1, %v2392_v24, %v2363_v48  ;;  %1495 = vmatpush1.bf16.msra.mxu1 %v1469_v12  ;;  %v2401_v29 = vpop.permute.xlu1 %2400  ;;  %2005 = vmatprep.subr.msk.bf16.mxu0 %vm263_vm8, %v1318_v49  ;;  %v1037_v18 = vsel %vm102_vm1, %v2393_v36, %v2392_v24  ;;  %v1020_v48 = vsel %vm83_vm0, %v2312_v51, %v2388_v34  ;;  %v4497_v44 = vunpack.i.l.bf16 %v3845_v28 }
 0x4f8   :  { %v1153_v25 = vpack.c.bf16 %v1036_v10, %v1018_v54  ;;  %v2403_v4 = vunpack.i.h.bf16 %v2401_v29  ;;  %v2402_v3 = vunpack.i.l.bf16 %v2401_v29  ;;  %v2396_v40 = vpop.permute.xlu0 %2395  ;;  %1568 = vmatprep.subr.bf16.mxu1 %v1154_v45  ;;  %v1038_v50 = vsel %vm102_vm1, %v2317_v19, %v2393_v36 }
 0x4f9   :  { %v2398_v1 = vunpack.i.h.bf16 %v2396_v40  ;;  %v2397_v22 = vunpack.i.l.bf16 %v2396_v40  ;;  %v1152_v23 = vpack.c.bf16 %v1037_v18, %v1019_v26  ;;  %v1151_v37 = vpack.c.bf16 %v1038_v50, %v1020_v48 }
 0x4fa   :  { %v1072_v15 = vsel %vm140_vm3, %v2402_v3, %v2348_v62  ;;  %2008 = vmatmul.mubr.msk.bf16.vlgmr.msra.gmra.mrb[16].mxu1 %vm259_vm9, %v4060_v17  ;;  %1433 = vmatpush1.bf16.msra.mxu0 %v1337_v41  ;;  %v1073_v51 = vsel %vm140_vm3, %v2403_v4, %v2402_v3  ;;  %v4496_v62 = vunpack.i.h.bf16 %v3880_v20  ;;  %v4498_v41 = vunpack.i.h.bf16 %v3894_v32 }
 0x4fb   :  { %v1054_v2 = vsel %vm121_vm2, %v2397_v22, %v2378_v57  ;;  %1569 = vmatpush1.bf16.msra.mxu1 %v1153_v25  ;;  %v2411_v13 = vpop.permute.xlu1 %2410  ;;  %1527 = vmatprep.subr.bf16.mxu0 %v1152_v23  ;;  %v1055_v19 = vsel %vm121_vm2, %v2398_v1, %v2397_v22  ;;  %v1056_v57 = vsel %vm121_vm2, %v4497_v44, %v2398_v1 }
 0x4fc   :  { %v1074_v34 = vsel %vm140_vm3, %v4496_v62, %v2403_v4  ;;  %v1159_v43 = vpack.c.bf16 %v1072_v15, %v1054_v2  ;;  %v2406_v42 = vpop.permute.xlu0 %2405  ;;  %1570 = vmatprep.subr.bf16.mxu1 %v1160_v0  ;;  %1600 = vmatprep.mubr.bf16.mxu1 %v4485_v58  ;;  %v1158_v24 = vpack.c.bf16 %v1073_v51, %v1055_v19  ;;  %v2413_v20 = vunpack.i.h.bf16 %v2411_v13 }
 0x4fd   :  { %v2408_v49 = vunpack.i.h.bf16 %v2406_v42  ;;  %v2407_v36 = vunpack.i.l.bf16 %v2406_v42  ;;  %2006 = vmatmul.mubr.msk.bf16.vlgmr.msra.gmra.mrb[16].mxu0 %vm259_vm9, %v3748_v35  ;;  %v2412_v63 = vunpack.i.l.bf16 %v2411_v13  ;;  %v1157_v45 = vpack.c.bf16 %v1074_v34, %v1056_v57 }
 0x4fe   :  { %1528 = vmatpush1.bf16.msra.mxu0 %v1151_v37  ;;  %1559 = vmatprep.mubr.bf16.mxu0 %v4485_v58 }
 0x4ff   :  { %v1089_v54 = vsel %vm159_vm4, %v2408_v49, %v2407_v36  ;;  %1571 = vmatpush1.bf16.msra.mxu1 %v1159_v43  ;;  %v1084_v12 = vpop.permute.xlu1 %1083  ;;  %1529 = vmatprep.subr.bf16.mxu0 %v1158_v24  ;;  %v1094_v28 = vsel %vm159_vm4, %v2407_v36, %v3951_v31  ;;  %v1107_v31 = vsel %vm178_vm6, %v2413_v20, %v2412_v63 }
 0x500   :  { %v1165_v26 = vpack.c.bf16 %v1089_v54, %v3650_v33  ;;  %v1090_v35 = vsel %vm159_vm4, %v1084_v12, %v2408_v49  ;;  %v2416_v10 = vpop.permute.xlu0 %2415  ;;  %v1166_v29 = vpack.c.bf16 %v1094_v28, %v3574_v53  ;;  %v1091_v18 = vsel %vm159_vm4, %v4498_v41, %v1084_v12 }
 0x501   :  { %v1164_v30 = vpack.c.bf16 %v1090_v35, %v3761_v59  ;;  %v2418_v48 = vunpack.i.h.bf16 %v2416_v10  ;;  %v2417_v25 = vunpack.i.l.bf16 %v2416_v10  ;;  %v1112_v53 = vsel %vm178_vm6, %v2412_v63, %v2368_v14 }
 0x502   :  { %1572 = vmatprep.subr.bf16.mxu1 %v1166_v29  ;;  %1530 = vmatpush1.bf16.msra.mxu0 %v1157_v45  ;;  %v1163_v32 = vpack.c.bf16 %v1091_v18, %v3647_v46 }
 0x503   :  { %v1125_v33 = vsel %vm197_vm5, %v2418_v48, %v2417_v25  ;;  %1573 = vmatpush1.bf16.msra.mxu1 %v1165_v26  ;;  %v1102_v4 = vpop.permute.xlu1 %1101  ;;  %1531 = vmatprep.subr.bf16.mxu0 %v1164_v30  ;;  %v1130_v59 = vsel %vm197_vm5, %v2417_v25, %v2373_v47 }
 0x504   :  { %v1171_v3 = vpack.c.bf16 %v1125_v33, %v1107_v31  ;;  %v2421_v40 = vpop.permute.xlu0 %2420  ;;  %v1172_v50 = vpack.c.bf16 %v1130_v59, %v1112_v53  ;;  %v1108_v46 = vsel %vm178_vm6, %v1102_v4, %v2413_v20  ;;  %v1109_v47 = vsel %vm178_vm6, %v2367_v8, %v1102_v4 }
 0x505   :  { %v2423_v1 = vunpack.i.h.bf16 %v2421_v40  ;;  %v2422_v22 = vunpack.i.l.bf16 %v2421_v40 }
 0x506   :  { %1574 = vmatprep.subr.bf16.mxu1 %v1172_v50  ;;  %1532 = vmatpush1.bf16.msra.mxu0 %v1163_v32 }
 0x507   :  { %v1148_v23 = vsel %vm216_vm7, %v2423_v1, %v2343_v21  ;;  %1575 = vmatpush1.bf16.msra.mxu1 %v1171_v3  ;;  %v1138_v14 = vpop.permute.xlu1 %1137  ;;  %v1143_v15 = vsel %vm216_vm7, %v2422_v22, %v2423_v1 }
 0x508   :  { %v1178_v0 = vpack.c.bf16 %v1148_v23, %v1148_v23  ;;  %v1120_v51 = vpop.permute.xlu0 %1119  ;;  %v1177_v2 = vpack.c.bf16 %v1143_v15, %v1143_v15  ;;  %v1144_v61 = vsel %vm216_vm7, %v1138_v14, %v2422_v22  ;;  %v1145_v21 = vsel %vm216_vm7, %v2383_v60, %v1138_v14 }
 0x509   :  { %v1126_v13 = vsel %vm197_vm5, %v1120_v51, %v2418_v48  ;;  %v1127_v9 = vsel %vm197_vm5, %v2372_v7, %v1120_v51  ;;  %v1175_v62 = vpack.c.bf16 %v1145_v21, %v1145_v21  ;;  %v1176_v27 = vpack.c.bf16 %v1144_v61, %v1144_v61 }
 0x50a   :  { %v1169_v8 = vpack.c.bf16 %v1127_v9, %v1109_v47  ;;  %v1170_v19 = vpack.c.bf16 %v1126_v13, %v1108_v46  ;;  %2011 = vmatprep.subr.msk.bf16.mxu1 %vm263_vm8, %v1178_v0  ;;  %v1481_v37 = vsel %vm263_vm8, %v1177_v2, 0 }
 0x50b   :  { %1577 = vmatpush1.bf16.msra.mxu1 %v1481_v37  ;;  %v1475_v56 = vsel %vm263_vm8, %v1175_v62, 0 }
 0x50c   :  { %1533 = vmatprep.subr.bf16.mxu0 %v1170_v19 }
 0x50d   :  { %1534 = vmatpush1.bf16.msra.mxu0 %v1169_v8 }
 0x50e   :  { %2009 = vmatprep.subr.msk.bf16.mxu0 %vm263_vm8, %v1176_v27  ;;  %2012 = vmatmul.mubr.msk.bf16.vlgmr.msra.gmra.mrb[20].mxu1 %vm259_vm9, %v4060_v17 }
 0x50f   :  { %1905 = vmatprep.mubr.bf16.mxu1 %v4485_v58 }
 0x511   :  { %1536 = vmatpush1.bf16.msra.mxu0 %v1475_v56  ;;  %v2633_v56 = vmov 3  }
 0x512   :  { %2520 = vset.pattern.permute.xlu1 %v2633_v56  ;;  %2521 = vset.pattern.permute.xlu0 %v2633_v56 }
 0x514   :  { %2010 = vmatmul.mubr.msk.bf16.vlgmr.msra.gmra.mrb[20].mxu0 %vm259_vm9, %v4060_v17 }
 0x515   :  { %1864 = vmatprep.mubr.bf16.mxu0 %v4485_v58 }
 0x519   :  { %v1611_v24 = vpop.permute.xlu0 %1610 }
 0x548   :  { %v1417_v7 = vpop.f32.mrb[12].mxu1 }
 0x549   :  { %v1419_v60 = vpop.f32.mrb[13].mxu1 }
 0x54a   :  { %v1421_v34 = vpop.f32.mrb[14].mxu1 }
 0x54b   :  { %v1422_v43 = vpop.f32.mrb[15].mxu1 }
 0x5b4   :  { %v1376_v42 = vpop.f32.mrb[12].mxu0 }
 0x5b5   :  { %v1378_v44 = vpop.f32.mrb[13].mxu0 }
 0x5b6   :  { %v1380_v57 = vpop.f32.mrb[14].mxu0 }
 0x5b7   :  { %v1381_v49 = vpop.f32.mrb[15].mxu0 }
 0x5cd   :  { %v1520_v36 = vpop.f32.mrb[16].mxu1 }
 0x5ce   :  { %v1521_v20 = vadd.f32 %v1520_v36, %v1376_v42  ;;  %v1522_v63 = vpop.f32.mrb[17].mxu1 }
 0x5cf   :  { %v1523_v54 = vadd.f32 %v1522_v63, %v1378_v44  ;;  %v1524_v12 = vpop.f32.mrb[18].mxu1 }
 0x5d0   :  { %v1613_v28 = vadd.f32 %v1611_v24, %v1521_v20  ;;  %v1458_v45 = vpop.f32.mrb[16].mxu0  ;;  %v1525_v26 = vpop.f32.mrb[19].mxu1 }
 0x5d1   :  { %v1614_v17 = vadd.f32 %v1611_v24, %v1523_v54  ;;  %v1460_v35 = vpop.f32.mrb[17].mxu0 }
 0x5d2   :  { %v1619_v10 = vmax.f32 %v1613_v28, 0.0  ;;  %v1462_v29 = vpop.f32.mrb[18].mxu0 }
 0x5d3   :  { %v1620_v41 = vmax.f32 %v1614_v17, 0.0  ;;  %v1463_v18 = vpop.f32.mrb[19].mxu0 }
 0x5d4   :  { %v4161_v30 = vmul.f32 %v1619_v10, %v3010_v11 }
 0x5d5   :  { %v4164_v48 = vmul.f32 %v1620_v41, %v3013_v55 }
 0x5d6   :  { %1721 = vrot.lane.b32.xlu0 %v4161_v30, %s2628_s30  ;;  %1703 = vrot.lane.b32.xlu1 %v4161_v30, %s2626_s28 }
 0x5d7   :  { %v2435_v25 = vpack.i.bf16 %v4164_v48, %v4161_v30 }
 0x5da   :  { %2436 = vrot.lane.b32.xlu0 %v2435_v25, %s2625_s27  ;;  %2426 = vrot.lane.b32.xlu1 %v2435_v25, %s2622_s25 }
 0x5de   :  { %2431 = vrot.lane.b32.xlu1 %v2435_v25, %s2623_s2 }
 0x5e1   :  { %v1602_v31 = vpop.f32.mrb[20].mxu1 }
 0x5e2   :  { %v1603_v33 = vadd.f32 %v1602_v31, %v1458_v45  ;;  %v1604_v4 = vpop.f32.mrb[21].mxu1  ;;  %2441 = vrot.lane.b32.xlu1 %v2435_v25, %s2624_s26 }
 0x5e3   :  { %v1605_v53 = vadd.f32 %v1604_v4, %v1460_v35  ;;  %v1606_v59 = vpop.f32.mrb[22].mxu1 }
 0x5e4   :  { %v1607_v32 = vpop.f32.mrb[23].mxu1  ;;  %v1617_v13 = vadd.f32 %v1611_v24, %v1603_v33 }
 0x5e5   :  { %v1618_v23 = vadd.f32 %v1611_v24, %v1605_v53 }
 0x5e6   :  { %v1623_v8 = vmax.f32 %v1617_v13, 0.0 }
 0x5e7   :  { %v1561_v3 = vpop.f32.mrb[20].mxu0  ;;  %v1624_v47 = vmax.f32 %v1618_v23, 0.0 }
 0x5e8   :  { %v1562_v40 = vadd.f32 %v1561_v3, %v1417_v7  ;;  %v1563_v50 = vpop.f32.mrb[21].mxu0  ;;  %v4200_v37 = vmul.f32 %v1623_v8, %v3066_v5 }
 0x5e9   :  { %v1564_v1 = vadd.f32 %v1563_v50, %v1419_v60  ;;  %v1565_v22 = vpop.f32.mrb[22].mxu0  ;;  %v4182_v2 = vmul.f32 %v1624_v47, %v3039_v52 }
 0x5ea   :  { %v1615_v14 = vadd.f32 %v1611_v24, %v1562_v40  ;;  %v1566_v15 = vpop.f32.mrb[23].mxu0 }
 0x5eb   :  { %v1616_v21 = vadd.f32 %v1611_v24, %v1564_v1 }
 0x5ec   :  { %v1621_v46 = vmax.f32 %v1615_v14, 0.0 }
 0x5ed   :  { %v1622_v9 = vmax.f32 %v1616_v21, 0.0 }
 0x5ee   :  { %v4177_v0 = vmul.f32 %v1621_v46, %v3034_v39 }
 0x5ef   :  { %v4197_v19 = vmul.f32 %v1622_v9, %v3063_v38 }
 0x5f0   :  { %v2445_v51 = vpack.i.bf16 %v4177_v0, %v4164_v48  ;;  %v2465_v61 = vpack.i.bf16 %v4177_v0, %v4182_v2 }
 0x5f1   :  { %v2480_v62 = vpack.i.bf16 %v4200_v37, %v4197_v19  ;;  %v2495_v27 = vpack.i.bf16 %v4197_v19, %v4177_v0 }
 0x5f2   :  { %2446 = vrot.lane.b32.xlu0 %v2445_v51, %s2626_s28  ;;  %2456 = vrot.lane.b32.xlu1 %v2445_v51, %s2627_s29 }
 0x5f6   :  { %2451 = vrot.lane.b32.xlu0 %v2445_v51, %s2628_s30  ;;  %2466 = vrot.lane.b32.xlu1 %v2465_v61, %s2623_s2 }
 0x5fa   :  { %2461 = vrot.lane.b32.xlu0 %v2465_v61, %s2622_s25  ;;  %1695 = vrot.lane.b32.xlu1 %v4182_v2, %s2624_s26 }
 0x5fe   :  { %2471 = vrot.lane.b32.xlu0 %v2465_v61, %s2625_s27  ;;  %1739 = vrot.lane.b32.xlu1 %v4161_v30, %s2627_s29 }
 0x602   :  { %2476 = vrot.lane.b32.xlu0 %v2435_v25, %s2630_s5  ;;  %1761 = vrot.lane.b32.xlu1 %v4177_v0, %s2630_s5 }
 0x606   :  { %2481 = vrot.lane.b32.xlu0 %v2480_v62, %s2622_s25  ;;  %2486 = vrot.lane.b32.xlu1 %v2480_v62, %s2623_s2 }
 0x60a   :  { %2491 = vrot.lane.b32.xlu0 %v2480_v62, %s2625_s27  ;;  %2496 = vrot.lane.b32.xlu1 %v2495_v27, %s2624_s26 }
 0x60e   :  { %1693 = vrot.lane.b32.xlu0 %v4200_v37, %s2624_s26  ;;  %2501 = vrot.lane.b32.xlu1 %v2480_v62, %s2626_s28 }
 0x612   :  { %1713 = vrot.lane.b32.xlu0 %v4182_v2, %s2626_s28  ;;  %2506 = vrot.lane.b32.xlu1 %v2480_v62, %s2628_s30 }
 0x616   :  { %1731 = vrot.lane.b32.xlu0 %v4182_v2, %s2628_s30  ;;  %2511 = vrot.lane.b32.xlu1 %v2480_v62, %s2627_s29 }
 0x61a   :  { %1749 = vrot.lane.b32.xlu0 %v4182_v2, %s2627_s29  ;;  %2516 = vrot.lane.b32.xlu1 %v2480_v62, %s2630_s5 }
 0x61e   :  { %1767 = vrot.lane.b32.xlu0 %v4182_v2, %s2630_s5  ;;  %1808 = vperm.xlu1 %2520, %v3789_v6  }
 0x648   :  { %v4228_v7 = vpop.permute.xlu1 %1703  ;;  %v4240_v24 = vpop.permute.xlu0 %1721 }
 0x64c   :  { %v4230_v60 = vpop.permute.xlu1 %2426  ;;  %v4242_v20 = vpop.permute.xlu0 %2436 }
 0x64d   :  { %v2429_v34 = vunpack.i.h.bf16 %v4230_v60  ;;  %v2428_v43 = vunpack.i.l.bf16 %v4230_v60  ;;  %v2439_v35 = vunpack.i.h.bf16 %v4242_v20  ;;  %v2438_v10 = vunpack.i.l.bf16 %v4242_v20 }
 0x64f   :  { %v1647_v49 = vsel %vm83_vm0, %v2428_v43, %v2429_v34  ;;  %v1683_v32 = vsel %vm121_vm2, %v2438_v10, %v2439_v35 }
 0x650   :  { %v2432_v42 = vpop.permute.xlu1 %2431 }
 0x651   :  { %v2434_v44 = vunpack.i.h.bf16 %v2432_v42  ;;  %v2433_v57 = vunpack.i.l.bf16 %v2432_v42 }
 0x653   :  { %v1665_v36 = vsel %vm102_vm1, %v2433_v57, %v2434_v44 }
 0x654   :  { %v1776_v6 = vpack.c.bf16 %v1665_v36, %v1647_v49  ;;  %v4244_v63 = vpop.permute.xlu1 %2441 }
 0x655   :  { %v2444_v26 = vunpack.i.h.bf16 %v4244_v63  ;;  %v2443_v17 = vunpack.i.l.bf16 %v4244_v63 }
 0x656   :  { %1832 = vmatprep.subr.bf16.mxu0 %v1776_v6 }
 0x657   :  { %v1701_v4 = vsel %vm140_vm3, %v2443_v17, %v2444_v26 }
 0x658   :  { %v1782_v1 = vpack.c.bf16 %v1701_v4, %v1683_v32 }
 0x664   :  { %v4246_v54 = vpop.permute.xlu0 %2446  ;;  %v4248_v12 = vpop.permute.xlu1 %2456 }
 0x665   :  { %v2449_v25 = vunpack.i.h.bf16 %v4246_v54  ;;  %v2448_v31 = vunpack.i.l.bf16 %v4246_v54  ;;  %v2459_v46 = vunpack.i.h.bf16 %v4248_v12  ;;  %v2458_v47 = vunpack.i.l.bf16 %v4248_v12 }
 0x667   :  { %v1718_v15 = vsel %vm159_vm4, %v2448_v31, %v2449_v25  ;;  %v1719_v21 = vsel %vm159_vm4, %v4228_v7, %v2448_v31  ;;  %v1754_v49 = vsel %vm197_vm5, %v2458_v47, %v2459_v46 }
 0x668   :  { %v4250_v28 = vpop.permute.xlu0 %2451  ;;  %v4252_v45 = vpop.permute.xlu1 %2466  ;;  %v1788_v27 = vpack.c.bf16 %v1718_v15, %v4164_v48  ;;  %v1787_v48 = vpack.c.bf16 %v1719_v21, %v4161_v30 }
 0x669   :  { %v2468_v29 = vunpack.i.l.bf16 %v4252_v45  ;;  %v2454_v22 = vunpack.i.h.bf16 %v4250_v28  ;;  %v2453_v23 = vunpack.i.l.bf16 %v4250_v28  ;;  %v2469_v13 = vunpack.i.h.bf16 %v4252_v45 }
 0x66b   :  { %v1666_v53 = vsel %vm102_vm1, %v2468_v29, %v2433_v57  ;;  %v1736_v57 = vsel %vm178_vm6, %v2453_v23, %v2454_v22  ;;  %v1664_v36 = vsel %vm102_vm1, %v2434_v44, %v2469_v13  ;;  %v1737_v44 = vsel %vm178_vm6, %v4240_v24, %v2453_v23 }
 0x66c   :  { %v4259_v41 = vpop.permute.xlu0 %2461  ;;  %v4261_v18 = vpop.permute.xlu1 %1695 }
 0x66d   :  { %v2463_v33 = vunpack.i.l.bf16 %v4259_v41  ;;  %v1702_v51 = vsel %vm140_vm3, %v4261_v18, %v2443_v17  ;;  %v2464_v56 = vunpack.i.h.bf16 %v4259_v41 }
 0x66f   :  { %v1648_v59 = vsel %vm83_vm0, %v2463_v33, %v2428_v43  ;;  %v1646_v4 = vsel %vm83_vm0, %v2429_v34, %v2464_v56 }
 0x670   :  { %v1775_v3 = vpack.c.bf16 %v1666_v53, %v1648_v59  ;;  %v4282_v40 = vpop.permute.xlu0 %2471  ;;  %v4284_v50 = vpop.permute.xlu1 %1739 }
 0x671   :  { %v2473_v14 = vunpack.i.l.bf16 %v4282_v40  ;;  %v1755_v30 = vsel %vm197_vm5, %v4284_v50, %v2458_v47  ;;  %v2474_v60 = vunpack.i.h.bf16 %v4282_v40 }
 0x672   :  { %1833 = vmatpush1.bf16.msra.mxu0 %v1775_v3 }
 0x673   :  { %v1684_v61 = vsel %vm121_vm2, %v2473_v14, %v2438_v10  ;;  %1834 = vmatprep.subr.bf16.mxu0 %v1782_v1  ;;  %v1794_v10 = vpack.c.bf16 %v1754_v49, %v1736_v57 }
 0x674   :  { %v1781_v9 = vpack.c.bf16 %v1702_v51, %v1684_v61  ;;  %v4306_v8 = vpop.permute.xlu0 %2476  ;;  %v4308_v62 = vpop.permute.xlu1 %1761  ;;  %v1777_v51 = vpack.c.bf16 %v1664_v36, %v1646_v4  ;;  %v1793_v61 = vpack.c.bf16 %v1755_v30, %v1737_v44 }
 0x675   :  { %v2479_v43 = vunpack.i.h.bf16 %v4306_v8  ;;  %v2478_v42 = vunpack.i.l.bf16 %v4306_v8 }
 0x676   :  { %1835 = vmatpush1.bf16.msra.mxu0 %v1781_v9 }
 0x677   :  { %1836 = vmatprep.subr.bf16.mxu0 %v1788_v27  ;;  %v1773_v31 = vsel %vm216_vm7, %v2478_v42, %v2479_v43  ;;  %v1772_v32 = vsel %vm216_vm7, %v2479_v43, %v4308_v62 }
 0x678   :  { %v2482_v6 = vpop.permute.xlu0 %2481  ;;  %v2487_v17 = vpop.permute.xlu1 %2486  ;;  %v1799_v47 = vpack.c.bf16 %v1773_v31, %v1773_v31  ;;  %v1800_v27 = vpack.c.bf16 %v1772_v32, %v1772_v32 }
 0x679   :  { %v2483_v53 = vunpack.i.l.bf16 %v2482_v6  ;;  %v2488_v59 = vunpack.i.l.bf16 %v2487_v17  ;;  %v2484_v3 = vunpack.i.h.bf16 %v2482_v6  ;;  %v2489_v1 = vunpack.i.h.bf16 %v2487_v17 }
 0x67a   :  { %1837 = vmatpush1.bf16.msra.mxu0 %v1787_v48  ;;  %v1682_v48 = vsel %vm121_vm2, %v2439_v35, %v2474_v60  ;;  %v1815_v45 = vsel %vm263_vm8, %v1799_v47, 0 }
 0x67b   :  { %1838 = vmatprep.subr.bf16.mxu0 %v1794_v10  ;;  %v1645_v34 = vsel %vm83_vm0, %v2464_v56, %v2483_v53  ;;  %v1663_v15 = vsel %vm102_vm1, %v2469_v13, %v2488_v59  ;;  %v1643_v56 = vsel %vm83_vm0, %v2484_v3, %v2463_v33  ;;  %v1661_v13 = vsel %vm102_vm1, %v2489_v1, %v2468_v29 }
 0x67c   :  { %v2492_v23 = vpop.permute.xlu0 %2491  ;;  %v2497_v21 = vpop.permute.xlu1 %2496  ;;  %v1778_v9 = vpack.c.bf16 %v1663_v15, %v1645_v34  ;;  %v1644_v36 = vsel %vm83_vm0, %v2483_v53, %v2484_v3  ;;  %v1662_v29 = vsel %vm102_vm1, %v2488_v59, %v2489_v1  ;;  %v1780_v31 = vpack.c.bf16 %v1661_v13, %v1643_v56  ;;  %v4376_v53 = vld [vmem:[#allocation7 + $0x10] sm:$0xf] }
 0x67d   :  { %v2493_v43 = vunpack.i.l.bf16 %v2492_v23  ;;  %v2499_v57 = vunpack.i.h.bf16 %v2497_v21  ;;  %v2498_v49 = vunpack.i.l.bf16 %v2497_v21  ;;  %v2494_v20 = vunpack.i.h.bf16 %v2492_v23 }
 0x67e   :  { %1839 = vmatpush1.bf16.msra.mxu0 %v1793_v61  ;;  %1873 = vmatprep.subr.bf16.mxu1 %v1778_v9  ;;  %v1779_v32 = vpack.c.bf16 %v1662_v29, %v1644_v36 }
 0x67f   :  { %v1700_v41 = vsel %vm140_vm3, %v2444_v26, %v2498_v49  ;;  %2013 = vmatprep.subr.msk.bf16.mxu0 %vm263_vm8, %v1800_v27  ;;  %1874 = vmatpush1.bf16.msra.mxu1 %v1777_v51  ;;  %v1681_v35 = vsel %vm121_vm2, %v2474_v60, %v2493_v43  ;;  %v1699_v63 = vsel %vm140_vm3, %v2498_v49, %v2499_v57 }
 0x680   :  { %v1694_v33 = vpop.permute.xlu0 %1693  ;;  %v2502_v6 = vpop.permute.xlu1 %2501  ;;  %v1783_v17 = vpack.c.bf16 %v1700_v41, %v1682_v48  ;;  %v1784_v30 = vpack.c.bf16 %v1699_v63, %v1681_v35  ;;  %v1679_v3 = vsel %vm121_vm2, %v2494_v20, %v2473_v14  ;;  %v1680_v14 = vsel %vm121_vm2, %v2493_v43, %v2494_v20 }
 0x681   :  { %v2504_v10 = vunpack.i.h.bf16 %v2502_v6  ;;  %v2503_v26 = vunpack.i.l.bf16 %v2502_v6  ;;  %v1697_v4 = vsel %vm140_vm3, %v1694_v33, %v4261_v18  ;;  %v1698_v54 = vsel %vm140_vm3, %v2499_v57, %v1694_v33 }
 0x682   :  { %1841 = vmatpush1.bf16.msra.mxu0 %v1815_v45  ;;  %1875 = vmatprep.subr.bf16.mxu1 %v1784_v30  ;;  %v1786_v34 = vpack.c.bf16 %v1697_v4, %v1679_v3  ;;  %v1785_v47 = vpack.c.bf16 %v1698_v54, %v1680_v14 }
 0x683   :  { %v1717_v59 = vsel %vm159_vm4, %v2449_v25, %v2503_v26  ;;  %1914 = vmatprep.subr.bf16.mxu0 %v1780_v31  ;;  %v1716_v44 = vsel %vm159_vm4, %v2503_v26, %v2504_v10  ;;  %1876 = vmatpush1.bf16.msra.mxu1 %v1783_v17 }
 0x684   :  { %v1714_v18 = vpop.permute.xlu0 %1713  ;;  %v2507_v1 = vpop.permute.xlu1 %2506  ;;  %v1790_v60 = vpack.c.bf16 %v1716_v44, %v4197_v19  ;;  %v1789_v25 = vpack.c.bf16 %v1717_v59, %v4177_v0 }
 0x685   :  { %2014 = vmatmul.mubr.msk.bf16.vlgmr.msra.gmra.mrb[24].mxu0 %vm259_vm9, %v4376_v53  ;;  %v1720_v40 = vsel %vm159_vm4, %v1714_v18, %v4228_v7  ;;  %v2509_v19 = vunpack.i.h.bf16 %v2507_v1  ;;  %v2508_v15 = vunpack.i.l.bf16 %v2507_v1  ;;  %v1715_v61 = vsel %vm159_vm4, %v2504_v10, %v1714_v18 }
 0x686   :  { %1877 = vmatprep.subr.bf16.mxu1 %v1790_v60  ;;  %1915 = vmatpush1.bf16.msra.mxu0 %v1779_v32  ;;  %v1792_v23 = vpack.c.bf16 %v1720_v40, %v4182_v2  ;;  %v1791_v43 = vpack.c.bf16 %v1715_v61, %v4200_v37 }
 0x687   :  { %1916 = vmatprep.subr.bf16.mxu0 %v1786_v34  ;;  %1946 = vmatprep.mubr.bf16.mxu0 %v4485_v58  ;;  %v1735_v9 = vsel %vm178_vm6, %v2454_v22, %v2508_v15  ;;  %v1734_v27 = vsel %vm178_vm6, %v2508_v15, %v2509_v19 }
 0x688   :  { %v1732_v0 = vpop.permute.xlu0 %1731  ;;  %v2512_v51 = vpop.permute.xlu1 %2511  ;;  %1878 = vmatpush1.bf16.msra.mxu1 %v1789_v25 }
 0x689   :  { %v2514_v7 = vunpack.i.h.bf16 %v2512_v51  ;;  %v2513_v21 = vunpack.i.l.bf16 %v2512_v51  ;;  %v1738_v28 = vsel %vm178_vm6, %v1732_v0, %v4240_v24  ;;  %v1733_v37 = vsel %vm178_vm6, %v2509_v19, %v1732_v0 }
 0x68a   :  { %1917 = vmatpush1.bf16.msra.mxu0 %v1785_v47 }
 0x68b   :  { %v1753_v58 = vsel %vm197_vm5, %v2459_v46, %v2513_v21  ;;  %1918 = vmatprep.subr.bf16.mxu0 %v1792_v23  ;;  %v1752_v2 = vsel %vm197_vm5, %v2513_v21, %v2514_v7 }
 0x68c   :  { %v1795_v57 = vpack.c.bf16 %v1753_v58, %v1735_v9  ;;  %v1750_v22 = vpop.permute.xlu0 %1749  ;;  %v2517_v49 = vpop.permute.xlu1 %2516  ;;  %v1796_v12 = vpack.c.bf16 %v1752_v2, %v1734_v27 }
 0x68d   :  { %v1751_v46 = vsel %vm197_vm5, %v2514_v7, %v1750_v22  ;;  %v1756_v56 = vsel %vm197_vm5, %v1750_v22, %v4284_v50  ;;  %v2519_v13 = vunpack.i.h.bf16 %v2517_v49  ;;  %v2518_v48 = vunpack.i.l.bf16 %v2517_v49 }
 0x68e   :  { %v1798_v36 = vpack.c.bf16 %v1756_v56, %v1738_v28  ;;  %1879 = vmatprep.subr.bf16.mxu1 %v1796_v12  ;;  %1919 = vmatpush1.bf16.msra.mxu0 %v1791_v43  ;;  %v1797_v45 = vpack.c.bf16 %v1751_v46, %v1733_v37 }
 0x68f   :  { %v1770_v24 = vsel %vm216_vm7, %v2518_v48, %v2519_v13  ;;  %1880 = vmatpush1.bf16.msra.mxu1 %v1795_v57  ;;  %v1771_v41 = vsel %vm216_vm7, %v4308_v62, %v2518_v48 }
 0x690   :  { %v1802_v29 = vpack.c.bf16 %v1770_v24, %v1770_v24  ;;  %v1768_v20 = vpop.permute.xlu0 %1767  ;;  %1920 = vmatprep.subr.bf16.mxu0 %v1798_v36  ;;  %v1801_v50 = vpack.c.bf16 %v1771_v41, %v1771_v41 }
 0x691   :  { %v1769_v33 = vsel %vm216_vm7, %v2519_v13, %v1768_v20  ;;  %v1774_v6 = vsel %vm216_vm7, %v1768_v20, %v2478_v42 }
 0x692   :  { %v1803_v35 = vpack.c.bf16 %v1769_v33, %v1769_v33  ;;  %v1804_v63 = vpack.c.bf16 %v1774_v6, %v1774_v6  ;;  %2015 = vmatprep.subr.msk.bf16.mxu1 %vm263_vm8, %v1802_v29  ;;  %1921 = vmatpush1.bf16.msra.mxu0 %v1797_v45  ;;  %v1821_v62 = vsel %vm263_vm8, %v1801_v50, 0 }
 0x693   :  { %1882 = vmatpush1.bf16.msra.mxu1 %v1821_v62 }
 0x694   :  { %2017 = vmatprep.subr.msk.bf16.mxu0 %vm263_vm8, %v1804_v63  ;;  %v1827_v17 = vsel %vm263_vm8, %v1803_v35, 0 }
 0x696   :  { %2016 = vmatmul.mubr.msk.bf16.vlgmr.msra.gmra.mrb[24].mxu1 %vm259_vm9, %v4376_v53  ;;  %1923 = vmatpush1.bf16.msra.mxu0 %v1827_v17 }
 0x699   :  { %2018 = vmatmul.mubr.msk.bf16.vlgmr.msra.gmra.mrb[28].mxu0 %vm259_vm9, %v4376_v53 }
 0x69d   :  { %v1809_v16 = vpop.permute.xlu1 %1808 }
 0x758   :  { %v1866_v8 = vpop.f32.mrb[24].mxu0 }
 0x759   :  { %v1867_v42 = vadd.f32 %v1866_v8, %v1809_v16  ;;  %v1868_v10 = vpop.f32.mrb[25].mxu0 }
 0x75a   :  { %v1869_v26 = vadd.f32 %v1868_v10, %v1809_v16  ;;  %v1870_v31 = vpop.f32.mrb[26].mxu0 }
 0x75b   :  { %v1955_v4 = vmax.f32 %v1867_v42, 0.0  ;;  %v1871_v30 = vpop.f32.mrb[27].mxu0 }
 0x75c   :  { %v1956_v59 = vmax.f32 %v1869_v26, 0.0 }
 0x75d   :  { %v1961_v44 = vmul.f32 %v1955_v4, %v3010_v11 }
 0x75e   :  { %v1962_v32 = vmul.f32 %v1956_v59, %v3013_v55 }
 0x75f   :  { %1967 = vst [vmem:[#allocation8] sm:$0xff] %v1961_v44 }
 0x760   :  { %1968 = vst [vmem:[#allocation8 + $0x8] sm:$0xff] %v1962_v32 }
 0x769   :  { %v1907_v3 = vpop.f32.mrb[24].mxu1 }
 0x76a   :  { %v1908_v18 = vadd.f32 %v1907_v3, %v1809_v16  ;;  %v1909_v1 = vpop.f32.mrb[25].mxu1 }
 0x76b   :  { %v1910_v60 = vadd.f32 %v1909_v1, %v1809_v16  ;;  %v1911_v53 = vpop.f32.mrb[26].mxu1 }
 0x76c   :  { %v1957_v54 = vmax.f32 %v1908_v18, 0.0  ;;  %v1912_v34 = vpop.f32.mrb[27].mxu1  ;;  %v1948_v25 = vpop.f32.mrb[28].mxu0 }
 0x76d   :  { %v1958_v40 = vmax.f32 %v1910_v60, 0.0  ;;  %v1949_v14 = vadd.f32 %v1948_v25, %v1809_v16  ;;  %v1950_v19 = vpop.f32.mrb[29].mxu0 }
 0x76e   :  { %v1963_v15 = vmul.f32 %v1957_v54, %v3034_v39  ;;  %v1951_v47 = vadd.f32 %v1950_v19, %v1809_v16  ;;  %v1952_v0 = vpop.f32.mrb[30].mxu0 }
 0x76f   :  { %v1964_v11 = vmul.f32 %v1958_v40, %v3063_v38  ;;  %v1959_v55 = vmax.f32 %v1949_v14, 0.0  ;;  %v1953_v51 = vpop.f32.mrb[31].mxu0 }
 0x770   :  { %1969 = vst [vmem:[#allocation8 + $0x10] sm:$0xff] %v1963_v15  ;;  %v1960_v61 = vmax.f32 %v1951_v47, 0.0 }
 0x771   :  { %1970 = vst [vmem:[#allocation8 + $0x18] sm:$0xff] %v1964_v11  ;;  %v1965_v23 = vmul.f32 %v1959_v55, %v3066_v5 }
 0x772   :  { %v1966_v7 = vmul.f32 %v1960_v61, %v3039_v52 }
 0x773   :  { %1971 = vst [vmem:[#allocation8 + $0x20] sm:$0xff] %v1965_v23 }
 0x774   :  { %1972 = vst [vmem:[#allocation8 + $0x28] sm:$0xff] %v1966_v7 }
 0x775   :  { %2600 = shalt.err (!%p2597_p0)
}
 0x776   :  { %s2601_s13 = scalar_lea.hbm %s4467_s4, 768 }
 0x777   :  { %p2602_p1 = scmp.ne.s32.totalorder %s4467_s4, %s2601_s13  ;;  %p2605_p2 = scmp.lt.u32.totalorder %s2601_s13, %s4467_s4 }
 0x779   :  { %p2607_p3 = pnand %p2605_p2, %p2602_p1 }
 0x77b   :  { %2610 = shalt.err (!%p2607_p3)
}
 0x77c   :  { %1982 = dma.vmem_to_hbm [thread:$0]  %s1980_s10, 768, %s4467_s4, [#allocation4]  }
 0x77d   :  { %2615 = dma.done.wait [#allocation4], 768  }
 0x77e   :  { %2616 = vsyncadd [#allocation4], 4294966528 }
 0x77f   :  { %1986 = vsyncpa [#allocation3], 1 }
 0x780   :  { %1987 = vsyncpa [#allocation6], 1 }
 0x781   :  { %1988 = vsyncpa [#allocation4], 1 }

</bundles_post_ra>
